<compile_context>
chip_gen: v7x
topology: tpu7x:2x2x1
jax: 0.10.0
libtpu: 0.0.40
codegen_flags: <defaults>
</compile_context>

<pallas_src>
import jax
import jax.numpy as jnp
from jax import lax
from jax.experimental import pallas as pl
from jax.experimental.pallas import tpu as pltpu

PADL = 16  # left pad of the conv1 scratch: interior store is bf16-tile aligned


def bottleneck_kernel(x_ref, w1_ref, b1_ref, w2_ref, b2_ref, w3_ref, b3_ref,
                      out_ref, mid_ref):
    # x_ref  : (H, W, Cin)            f32  full image (resident across row tiles)
    # w1_ref : (Cin, Cmid)            bf16 (BN1 scale folded in)
    # w2_ref : (9*Cmid, Cmid)         bf16 (BN2 scale folded, kh/kw/cin row order)
    # w3_ref : (Cmid, Cout)           bf16 (BN3 scale folded in)
    # b*_ref : (1, C)                 f32  folded BN biases
    # out_ref: (TH, W, Cout)          f32  current row tile
    # mid_ref: (TH+2, PADL+W+8, Cmid) bf16 padded conv1-output scratch
    H, W, Cin = x_ref.shape
    Cmid = w1_ref.shape[1]
    TH, _, Cout = out_ref.shape

    t = pl.program_id(1)
    n_t = pl.num_programs(1)
    hstart = pl.multiple_of(t * TH, TH)

    w1 = w1_ref[...]
    b1 = b1_ref[...]

    def conv1(rows_bf16):  # (R, Cin) bf16 -> (R, Cmid) f32, post-BN1 + ReLU
        y = jnp.dot(rows_bf16, w1, preferred_element_type=jnp.float32)
        return jnp.maximum(y + b1, 0.0)

    # ---- conv1 + BN1 + ReLU on the TH interior rows (one MXU matmul) ----
    y1 = conv1(x_ref[pl.ds(hstart, TH)].reshape(TH * W, Cin).astype(jnp.bfloat16))

    # ---- conv1 on the 1-row halos (recomputed; zeroed at the image border) ----
    top_i = jnp.maximum(hstart - 1, 0)
    bot_i = jnp.minimum(hstart + TH, H - 1)
    y1_top = conv1(x_ref[pl.ds(top_i, 1)].reshape(W, Cin).astype(jnp.bfloat16))
    y1_bot = conv1(x_ref[pl.ds(bot_i, 1)].reshape(W, Cin).astype(jnp.bfloat16))
    y1_top = jnp.where(t > 0, y1_top, 0.0)        # 3x3 SAME pads with zeros
    y1_bot = jnp.where(t < n_t - 1, y1_bot, 0.0)

    # ---- stage into the padded bf16 scratch (interior store tile-aligned) ----
    mid_ref[1:TH + 1, PADL:PADL + W, :] = y1.reshape(TH, W, Cmid).astype(jnp.bfloat16)
    mid_ref[0:1, PADL:PADL + W, :] = y1_top.reshape(1, W, Cmid).astype(jnp.bfloat16)
    mid_ref[TH + 1:TH + 2, PADL:PADL + W, :] = y1_bot.reshape(1, W, Cmid).astype(jnp.bfloat16)
    zcol = jnp.zeros((TH + 2, 1, Cmid), mid_ref.dtype)
    mid_ref[:, PADL - 1:PADL, :] = zcol            # left 1-px W halo
    mid_ref[:, PADL + W:PADL + W + 1, :] = zcol    # right 1-px W halo

    midp = mid_ref[...]                            # (TH+2, PADL+W+8, Cmid) bf16

    # ---- conv2 (3x3, SAME, stride 1): im2col -> ONE fat matmul, K = 9*Cmid ----
    taps = []
    for kh in range(3):
        for kw in range(3):
            taps.append(midp[kh:kh + TH, PADL - 1 + kw:PADL - 1 + kw + W, :]
                        .reshape(TH * W, Cmid))
    patch = jnp.concatenate(taps, axis=-1)          # (TH*W, 9*Cmid) bf16
    y2 = jnp.dot(patch, w2_ref[...], preferred_element_type=jnp.float32)
    y2 = jnp.maximum(y2 + b2_ref[...], 0.0)

    # ---- conv3 (1x1, 4x expand) + BN3 : one MXU matmul ----
    y3 = jnp.dot(y2.astype(jnp.bfloat16), w3_ref[...],
                 preferred_element_type=jnp.float32) + b3_ref[...]

    # ---- residual add (identity = x row tile) + ReLU; lane-dense Cout store ----
    ident = x_ref[pl.ds(hstart, TH)]               # (TH, W, Cin) f32
    out_ref[...] = jnp.maximum(y3.reshape(TH, W, Cout) + ident, 0.0)


def bottleneck(x_nhwc, w1_hwio, w2_hwio, w3_hwio, s1, b1, s2, b2, s3, b3,
               *, tile_h=8):
    """x_nhwc: (N,H,W,Cin) f32; w1:(1,1,Cin,Cmid) w2:(3,3,Cmid,Cmid)
    w3:(1,1,Cmid,Cout) HWIO f32; s*/b*: per-channel folded eval-mode BN."""
    N, H, W, Cin = x_nhwc.shape
    Cmid = w1_hwio.shape[3]
    Cout = w3_hwio.shape[3]
    # stride=1, downsample=None path: identity skip needs Cout == Cin == 4*Cmid.
    assert Cout == Cin, "identity skip (stride=1, downsample=None) needs Cout == Cin"
    assert Cout == 4 * Cmid, "Bottleneck expansion factor must be 4"
    # TODO(synk): stride != 1 and a projection (downsample) shortcut are not
    # implemented; module defaults (stride=1, downsample=None) are assumed.
    th = min(tile_h, H)
    assert H % th == 0, "H must be divisible by the row-tile height"
    n_t = H // th

    bf16 = jnp.bfloat16
    # Fold eval-mode BN scales into the conv weights (exact, in f32), then cast
    # to bf16 MXU operands. Only the folded biases enter the kernel.
    w1 = (w1_hwio.reshape(Cin, Cmid) * s1[None, :]).astype(bf16)
    w2 = (w2_hwio * s2[None, None, None, :]).reshape(9 * Cmid, Cmid).astype(bf16)
    w3 = (w3_hwio.reshape(Cmid, Cout) * s3[None, :]).astype(bf16)
    b1r, b2r, b3r = b1.reshape(1, Cmid), b2.reshape(1, Cmid), b3.reshape(1, Cout)

    flops = 2 * N * n_t * W * ((th + 2) * Cin * Cmid
                               + th * 9 * Cmid * Cmid
                               + th * Cmid * Cout)
    bytes_accessed = (x_nhwc.size * 4 + N * H * W * Cout * 4
                      + (w1.size + w2.size + w3.size) * 2
                      + (b1r.size + b2r.size + b3r.size) * 4)

    full2 = lambda n, t: (0, 0)

    return pl.pallas_call(
        bottleneck_kernel,
        out_shape=jax.ShapeDtypeStruct((N, H, W, Cout), jnp.float32),
        grid_spec=pltpu.PrefetchScalarGridSpec(
            num_scalar_prefetch=0,
            grid=(N, n_t),
            in_specs=[
                # full image, resident across the row-tile axis (also identity)
                pl.BlockSpec((None, H, W, Cin), lambda n, t: (n, 0, 0, 0)),
                pl.BlockSpec((Cin, Cmid), full2),           # w1 (scale folded)
                pl.BlockSpec((1, Cmid), full2),             # bn1 bias
                pl.BlockSpec((9 * Cmid, Cmid), full2),      # w2 (im2col layout)
                pl.BlockSpec((1, Cmid), full2),             # bn2 bias
                pl.BlockSpec((Cmid, Cout), full2),          # w3 (scale folded)
                pl.BlockSpec((1, Cout), full2),             # bn3 bias
            ],
            out_specs=pl.BlockSpec((None, th, W, Cout), lambda n, t: (n, t, 0, 0)),
            scratch_shapes=[pltpu.VMEM((th + 2, PADL + W + 8, Cmid), jnp.bfloat16)],
        ),
        compiler_params=pltpu.CompilerParams(
            dimension_semantics=("parallel", "parallel"),
            vmem_limit_bytes=48 * 1024 * 1024),
        cost_estimate=pl.CostEstimate(flops=flops, transcendentals=0,
                                      bytes_accessed=bytes_accessed),
    )(x_nhwc, w1, b1r, w2, b2r, w3, b3r)


def reference_bottleneck(x, w1_hwio, w2_hwio, w3_hwio, s1, b1, s2, b2, s3, b3):
    """Pure-JAX reference with the same folded-scale / bf16-operand /
    f32-accumulate numerics as the kernel."""
    dn = ("NHWC", "HWIO", "NHWC")

    def conv(a, w, padding):
        return lax.conv_general_dilated(
            a.astype(jnp.bfloat16), w.astype(jnp.bfloat16), (1, 1), padding,
            dimension_numbers=dn, preferred_element_type=jnp.float32)

    out = jnp.maximum(conv(x, w1_hwio * s1, "VALID") + b1, 0.0)
    out = jnp.maximum(conv(out, w2_hwio * s2, "SAME") + b2, 0.0)
    out = conv(out, w3_hwio * s3, "VALID") + b3
    return jnp.maximum(out + x, 0.0)


if __name__ == "__main__":
    # ResNet-50 layer1-style identity Bottleneck: in=256, mid=64, out=256.
    N, Cin, H, W = 2, 256, 16, 16
    Cmid = Cin // 4
    Cout = Cmid * 4
    eps = 1e-5
    key = jax.random.PRNGKey(0)
    ks = jax.random.split(key, 16)

    # PyTorch-style input NCHW -> NHWC
    x_nchw = jax.random.normal(ks[0], (N, Cin, H, W), jnp.float32)
    x_nhwc = jnp.transpose(x_nchw, (0, 2, 3, 1))

    # torch conv weights (OIHW) -> HWIO
    w1_t = jax.random.normal(ks[1], (Cmid, Cin, 1, 1), jnp.float32) / jnp.sqrt(1.0 * Cin)
    w2_t = jax.random.normal(ks[2], (Cmid, Cmid, 3, 3), jnp.float32) / jnp.sqrt(9.0 * Cmid)
    w3_t = jax.random.normal(ks[3], (Cout, Cmid, 1, 1), jnp.float32) / jnp.sqrt(1.0 * Cmid)
    w1 = jnp.transpose(w1_t, (2, 3, 1, 0))   # (1,1,Cin,Cmid)
    w2 = jnp.transpose(w2_t, (2, 3, 1, 0))   # (3,3,Cmid,Cmid)
    w3 = jnp.transpose(w3_t, (2, 3, 1, 0))   # (1,1,Cmid,Cout)

    # BatchNorm (inference mode): fold running stats into scale/bias.
    # TODO(synk): training-mode BatchNorm (batch statistics) not implemented.
    def bn_fold(kg, kb, km, kv, c):
        g = 1.0 + 0.1 * jax.random.normal(kg, (c,), jnp.float32)
        be = 0.1 * jax.random.normal(kb, (c,), jnp.float32)
        m = 0.1 * jax.random.normal(km, (c,), jnp.float32)
        v = 0.5 + jnp.abs(jax.random.normal(kv, (c,), jnp.float32))
        s = g / jnp.sqrt(v + eps)
        return s, be - m * s

    s1, b1 = bn_fold(ks[4], ks[5], ks[6], ks[7], Cmid)
    s2, b2 = bn_fold(ks[8], ks[9], ks[10], ks[11], Cmid)
    s3, b3 = bn_fold(ks[12], ks[13], ks[14], ks[15], Cout)

    out = bottleneck(x_nhwc, w1, w2, w3, s1, b1, s2, b2, s3, b3)
    out = jax.block_until_ready(out)

    ref = reference_bottleneck(x_nhwc, w1, w2, w3, s1, b1, s2, b2, s3, b3)
    assert out.shape == (N, H, W, Cout)
    max_err = jnp.max(jnp.abs(out - ref))
    assert jnp.allclose(out, ref, atol=2e-3, rtol=2e-3), f"max err {max_err}"
    print("KERNEL_OK")
</pallas_src>

<mosaic_0001>
module attributes {stable_mosaic.version = 11 : i64} {
  func.func @bottleneck_kernel(%arg0: i32, %arg1: i32, %arg2: memref<1x16x16x256xf32, #tpu.memory_space<vmem>>, %arg3: memref<256x64xbf16, #tpu.memory_space<vmem>>, %arg4: memref<1x64xf32, #tpu.memory_space<vmem>>, %arg5: memref<576x64xbf16, #tpu.memory_space<vmem>>, %arg6: memref<1x64xf32, #tpu.memory_space<vmem>>, %arg7: memref<64x256xbf16, #tpu.memory_space<vmem>>, %arg8: memref<1x256xf32, #tpu.memory_space<vmem>>, %arg9: memref<1x8x16x256xf32, #tpu.memory_space<vmem>>, %arg10: memref<10x40x64xbf16, #tpu.memory_space<vmem>>) attributes {dimension_semantics = [#tpu.dimension_semantics<parallel>, #tpu.dimension_semantics<parallel>], iteration_bounds = array<i64: 2, 2>, scalar_prefetch = 0 : i64, scratch_operands = 1 : i64, tpu.core_type = #tpu.core_type<tc>, window_params = [{transform_indices = @transform_0, window_bounds = array<i64: 1, 16, 16, 256>}, {pipeline_mode = #tpu.pipeline_mode<synchronous>, transform_indices = @transform_1, window_bounds = array<i64: 256, 64>}, {pipeline_mode = #tpu.pipeline_mode<synchronous>, transform_indices = @transform_2, window_bounds = array<i64: 1, 64>}, {pipeline_mode = #tpu.pipeline_mode<synchronous>, transform_indices = @transform_3, window_bounds = array<i64: 576, 64>}, {pipeline_mode = #tpu.pipeline_mode<synchronous>, transform_indices = @transform_4, window_bounds = array<i64: 1, 64>}, {pipeline_mode = #tpu.pipeline_mode<synchronous>, transform_indices = @transform_5, window_bounds = array<i64: 64, 256>}, {pipeline_mode = #tpu.pipeline_mode<synchronous>, transform_indices = @transform_6, window_bounds = array<i64: 1, 256>}, {transform_indices = @transform_7, window_bounds = array<i64: 1, 8, 16, 256>}]} {
    %c8_i32 = arith.constant 8 : i32
    %0 = arith.muli %arg1, %c8_i32 : i32
    %1 = tpu.assume_multiple %0, 8 : i32
    %c0 = arith.constant 0 : index
    %c0_0 = arith.constant 0 : index
    %2 = vector.load %arg3[%c0, %c0_0] : memref<256x64xbf16, #tpu.memory_space<vmem>>, vector<256x64xbf16>
    %c0_1 = arith.constant 0 : index
    %c0_2 = arith.constant 0 : index
    %3 = vector.load %arg4[%c0_1, %c0_2] : memref<1x64xf32, #tpu.memory_space<vmem>>, vector<1x64xf32>
    %c0_3 = arith.constant 0 : index
    %4 = arith.index_cast %1 : i32 to index
    %c0_4 = arith.constant 0 : index
    %c0_5 = arith.constant 0 : index
    %5 = vector.load %arg2[%c0_3, %4, %c0_4, %c0_5] : memref<1x16x16x256xf32, #tpu.memory_space<vmem>>, vector<1x8x16x256xf32>
    %6 = vector.shape_cast %5 : vector<1x8x16x256xf32> to vector<8x16x256xf32>
    %7 = vector.shape_cast %6 : vector<8x16x256xf32> to vector<128x256xf32>
    %8 = arith.truncf %7 : vector<128x256xf32> to vector<128x256xbf16>
    %cst = arith.constant dense<0.000000e+00> : vector<128x64xf32>
    %9 = tpu.matmul %8, %2, %cst {dimension_numbers = #tpu.dot_dimension_numbers<[1], [0], [0], [1], [0, 0, 1, 1], [], []>} : vector<128x256xbf16>, vector<256x64xbf16>, vector<128x64xf32> -> vector<128x64xf32>
    %10 = vector.broadcast %3 : vector<1x64xf32> to vector<128x64xf32>
    %11 = arith.addf %9, %10 : vector<128x64xf32>
    %cst_6 = arith.constant 0.000000e+00 : f32
    %12 = vector.broadcast %cst_6 : f32 to vector<128x64xf32>
    %13 = arith.maximumf %11, %12 : vector<128x64xf32>
    %c1_i32 = arith.constant 1 : i32
    %14 = arith.subi %1, %c1_i32 : i32
    %c0_i32 = arith.constant 0 : i32
    %15 = arith.maxsi %14, %c0_i32 : i32
    %c8_i32_7 = arith.constant 8 : i32
    %16 = arith.addi %1, %c8_i32_7 : i32
    %c15_i32 = arith.constant 15 : i32
    %17 = arith.minsi %16, %c15_i32 : i32
    %c0_8 = arith.constant 0 : index
    %18 = arith.index_cast %15 : i32 to index
    %c0_9 = arith.constant 0 : index
    %c0_10 = arith.constant 0 : index
    %19 = vector.load %arg2[%c0_8, %18, %c0_9, %c0_10] : memref<1x16x16x256xf32, #tpu.memory_space<vmem>>, vector<1x1x16x256xf32>
    %20 = vector.shape_cast %19 : vector<1x1x16x256xf32> to vector<1x16x256xf32>
    %21 = vector.shape_cast %20 : vector<1x16x256xf32> to vector<16x256xf32>
    %22 = arith.truncf %21 : vector<16x256xf32> to vector<16x256xbf16>
    %cst_11 = arith.constant dense<0.000000e+00> : vector<16x64xf32>
    %23 = tpu.matmul %22, %2, %cst_11 {dimension_numbers = #tpu.dot_dimension_numbers<[1], [0], [0], [1], [0, 0, 1, 1], [], []>} : vector<16x256xbf16>, vector<256x64xbf16>, vector<16x64xf32> -> vector<16x64xf32>
    %24 = vector.broadcast %3 : vector<1x64xf32> to vector<16x64xf32>
    %25 = arith.addf %23, %24 : vector<16x64xf32>
    %cst_12 = arith.constant 0.000000e+00 : f32
    %26 = vector.broadcast %cst_12 : f32 to vector<16x64xf32>
    %27 = arith.maximumf %25, %26 : vector<16x64xf32>
    %c0_13 = arith.constant 0 : index
    %28 = arith.index_cast %17 : i32 to index
    %c0_14 = arith.constant 0 : index
    %c0_15 = arith.constant 0 : index
    %29 = vector.load %arg2[%c0_13, %28, %c0_14, %c0_15] : memref<1x16x16x256xf32, #tpu.memory_space<vmem>>, vector<1x1x16x256xf32>
    %30 = vector.shape_cast %29 : vector<1x1x16x256xf32> to vector<1x16x256xf32>
    %31 = vector.shape_cast %30 : vector<1x16x256xf32> to vector<16x256xf32>
    %32 = arith.truncf %31 : vector<16x256xf32> to vector<16x256xbf16>
    %cst_16 = arith.constant dense<0.000000e+00> : vector<16x64xf32>
    %33 = tpu.matmul %32, %2, %cst_16 {dimension_numbers = #tpu.dot_dimension_numbers<[1], [0], [0], [1], [0, 0, 1, 1], [], []>} : vector<16x256xbf16>, vector<256x64xbf16>, vector<16x64xf32> -> vector<16x64xf32>
    %34 = vector.broadcast %3 : vector<1x64xf32> to vector<16x64xf32>
    %35 = arith.addf %33, %34 : vector<16x64xf32>
    %cst_17 = arith.constant 0.000000e+00 : f32
    %36 = vector.broadcast %cst_17 : f32 to vector<16x64xf32>
    %37 = arith.maximumf %35, %36 : vector<16x64xf32>
    %c0_i32_18 = arith.constant 0 : i32
    %38 = arith.cmpi sgt, %arg1, %c0_i32_18 : i32
    %cst_19 = arith.constant 0.000000e+00 : f32
    %39 = vector.broadcast %cst_19 : f32 to vector<16x64xf32>
    %40 = arith.select %38, %27, %39 : vector<16x64xf32>
    %c1_i32_20 = arith.constant 1 : i32
    %41 = arith.cmpi slt, %arg1, %c1_i32_20 : i32
    %cst_21 = arith.constant 0.000000e+00 : f32
    %42 = vector.broadcast %cst_21 : f32 to vector<16x64xf32>
    %43 = arith.select %41, %37, %42 : vector<16x64xf32>
    %44 = vector.shape_cast %13 : vector<128x64xf32> to vector<8x16x64xf32>
    %45 = arith.truncf %44 : vector<8x16x64xf32> to vector<8x16x64xbf16>
    %c1 = arith.constant 1 : index
    %c16 = arith.constant 16 : index
    %c0_22 = arith.constant 0 : index
    %46 = vector.load %arg10[%c1, %c16, %c0_22] : memref<10x40x64xbf16, #tpu.memory_space<vmem>>, vector<8x16x64xbf16>
    tpu.vector_store %arg10[%c1, %c16, %c0_22], %45 {strides = array<i32>} : memref<10x40x64xbf16, #tpu.memory_space<vmem>>, vector<8x16x64xbf16>,
    %47 = vector.shape_cast %40 : vector<16x64xf32> to vector<1x16x64xf32>
    %48 = arith.truncf %47 : vector<1x16x64xf32> to vector<1x16x64xbf16>
    %c0_23 = arith.constant 0 : index
    %c16_24 = arith.constant 16 : index
    %c0_25 = arith.constant 0 : index
    %49 = vector.load %arg10[%c0_23, %c16_24, %c0_25] : memref<10x40x64xbf16, #tpu.memory_space<vmem>>, vector<1x16x64xbf16>
    tpu.vector_store %arg10[%c0_23, %c16_24, %c0_25], %48 {strides = array<i32>} : memref<10x40x64xbf16, #tpu.memory_space<vmem>>, vector<1x16x64xbf16>,
    %50 = vector.shape_cast %43 : vector<16x64xf32> to vector<1x16x64xf32>
    %51 = arith.truncf %50 : vector<1x16x64xf32> to vector<1x16x64xbf16>
    %c9 = arith.constant 9 : index
    %c16_26 = arith.constant 16 : index
    %c0_27 = arith.constant 0 : index
    %52 = vector.load %arg10[%c9, %c16_26, %c0_27] : memref<10x40x64xbf16, #tpu.memory_space<vmem>>, vector<1x16x64xbf16>
    tpu.vector_store %arg10[%c9, %c16_26, %c0_27], %51 {strides = array<i32>} : memref<10x40x64xbf16, #tpu.memory_space<vmem>>, vector<1x16x64xbf16>,
    %cst_28 = arith.constant 0.000000e+00 : bf16
    %53 = vector.broadcast %cst_28 : bf16 to vector<10x1x64xbf16>
    %c0_29 = arith.constant 0 : index
    %c15 = arith.constant 15 : index
    %c0_30 = arith.constant 0 : index
    %54 = vector.load %arg10[%c0_29, %c15, %c0_30] : memref<10x40x64xbf16, #tpu.memory_space<vmem>>, vector<10x1x64xbf16>
    tpu.vector_store %arg10[%c0_29, %c15, %c0_30], %53 {strides = array<i32>} : memref<10x40x64xbf16, #tpu.memory_space<vmem>>, vector<10x1x64xbf16>,
    %c0_31 = arith.constant 0 : index
    %c32 = arith.constant 32 : index
    %c0_32 = arith.constant 0 : index
    %55 = vector.load %arg10[%c0_31, %c32, %c0_32] : memref<10x40x64xbf16, #tpu.memory_space<vmem>>, vector<10x1x64xbf16>
    tpu.vector_store %arg10[%c0_31, %c32, %c0_32], %53 {strides = array<i32>} : memref<10x40x64xbf16, #tpu.memory_space<vmem>>, vector<10x1x64xbf16>,
    %c0_33 = arith.constant 0 : index
    %c0_34 = arith.constant 0 : index
    %c0_35 = arith.constant 0 : index
    %56 = vector.load %arg10[%c0_33, %c0_34, %c0_35] : memref<10x40x64xbf16, #tpu.memory_space<vmem>>, vector<10x40x64xbf16>
    %57 = vector.extract_strided_slice %56 {offsets = [0, 15, 0], sizes = [8, 16, 64], strides = [1, 1, 1]} : vector<10x40x64xbf16> to vector<8x16x64xbf16>
    %58 = vector.shape_cast %57 : vector<8x16x64xbf16> to vector<128x64xbf16>
    %59 = vector.extract_strided_slice %56 {offsets = [0, 16, 0], sizes = [8, 16, 64], strides = [1, 1, 1]} : vector<10x40x64xbf16> to vector<8x16x64xbf16>
    %60 = vector.shape_cast %59 : vector<8x16x64xbf16> to vector<128x64xbf16>
    %61 = vector.extract_strided_slice %56 {offsets = [0, 17, 0], sizes = [8, 16, 64], strides = [1, 1, 1]} : vector<10x40x64xbf16> to vector<8x16x64xbf16>
    %62 = vector.shape_cast %61 : vector<8x16x64xbf16> to vector<128x64xbf16>
    %63 = vector.extract_strided_slice %56 {offsets = [1, 15, 0], sizes = [8, 16, 64], strides = [1, 1, 1]} : vector<10x40x64xbf16> to vector<8x16x64xbf16>
    %64 = vector.shape_cast %63 : vector<8x16x64xbf16> to vector<128x64xbf16>
    %65 = vector.extract_strided_slice %56 {offsets = [1, 16, 0], sizes = [8, 16, 64], strides = [1, 1, 1]} : vector<10x40x64xbf16> to vector<8x16x64xbf16>
    %66 = vector.shape_cast %65 : vector<8x16x64xbf16> to vector<128x64xbf16>
    %67 = vector.extract_strided_slice %56 {offsets = [1, 17, 0], sizes = [8, 16, 64], strides = [1, 1, 1]} : vector<10x40x64xbf16> to vector<8x16x64xbf16>
    %68 = vector.shape_cast %67 : vector<8x16x64xbf16> to vector<128x64xbf16>
    %69 = vector.extract_strided_slice %56 {offsets = [2, 15, 0], sizes = [8, 16, 64], strides = [1, 1, 1]} : vector<10x40x64xbf16> to vector<8x16x64xbf16>
    %70 = vector.shape_cast %69 : vector<8x16x64xbf16> to vector<128x64xbf16>
    %71 = vector.extract_strided_slice %56 {offsets = [2, 16, 0], sizes = [8, 16, 64], strides = [1, 1, 1]} : vector<10x40x64xbf16> to vector<8x16x64xbf16>
    %72 = vector.shape_cast %71 : vector<8x16x64xbf16> to vector<128x64xbf16>
    %73 = vector.extract_strided_slice %56 {offsets = [2, 17, 0], sizes = [8, 16, 64], strides = [1, 1, 1]} : vector<10x40x64xbf16> to vector<8x16x64xbf16>
    %74 = vector.shape_cast %73 : vector<8x16x64xbf16> to vector<128x64xbf16>
    %75 = tpu.concatenate %58, %60, %62, %64, %66, %68, %70, %72, %74 in 1 : vector<128x64xbf16>, vector<128x64xbf16>, vector<128x64xbf16>, vector<128x64xbf16>, vector<128x64xbf16>, vector<128x64xbf16>, vector<128x64xbf16>, vector<128x64xbf16>, vector<128x64xbf16> -> vector<128x576xbf16>
    %c0_36 = arith.constant 0 : index
    %c0_37 = arith.constant 0 : index
    %76 = vector.load %arg5[%c0_36, %c0_37] : memref<576x64xbf16, #tpu.memory_space<vmem>>, vector<576x64xbf16>
    %cst_38 = arith.constant dense<0.000000e+00> : vector<128x64xf32>
    %77 = tpu.matmul %75, %76, %cst_38 {dimension_numbers = #tpu.dot_dimension_numbers<[1], [0], [0], [1], [0, 0, 1, 1], [], []>} : vector<128x576xbf16>, vector<576x64xbf16>, vector<128x64xf32> -> vector<128x64xf32>
    %c0_39 = arith.constant 0 : index
    %c0_40 = arith.constant 0 : index
    %78 = vector.load %arg6[%c0_39, %c0_40] : memref<1x64xf32, #tpu.memory_space<vmem>>, vector<1x64xf32>
    %79 = vector.broadcast %78 : vector<1x64xf32> to vector<128x64xf32>
    %80 = arith.addf %77, %79 : vector<128x64xf32>
    %cst_41 = arith.constant 0.000000e+00 : f32
    %81 = vector.broadcast %cst_41 : f32 to vector<128x64xf32>
    %82 = arith.maximumf %80, %81 : vector<128x64xf32>
    %83 = arith.truncf %82 : vector<128x64xf32> to vector<128x64xbf16>
    %c0_42 = arith.constant 0 : index
    %c0_43 = arith.constant 0 : index
    %84 = vector.load %arg7[%c0_42, %c0_43] : memref<64x256xbf16, #tpu.memory_space<vmem>>, vector<64x256xbf16>
    %cst_44 = arith.constant dense<0.000000e+00> : vector<128x256xf32>
    %85 = tpu.matmul %83, %84, %cst_44 {dimension_numbers = #tpu.dot_dimension_numbers<[1], [0], [0], [1], [0, 0, 1, 1], [], []>} : vector<128x64xbf16>, vector<64x256xbf16>, vector<128x256xf32> -> vector<128x256xf32>
    %c0_45 = arith.constant 0 : index
    %c0_46 = arith.constant 0 : index
    %86 = vector.load %arg8[%c0_45, %c0_46] : memref<1x256xf32, #tpu.memory_space<vmem>>, vector<1x256xf32>
    %87 = vector.broadcast %86 : vector<1x256xf32> to vector<128x256xf32>
    %88 = arith.addf %85, %87 : vector<128x256xf32>
    %c0_47 = arith.constant 0 : index
    %89 = arith.index_cast %1 : i32 to index
    %c0_48 = arith.constant 0 : index
    %c0_49 = arith.constant 0 : index
    %90 = vector.load %arg2[%c0_47, %89, %c0_48, %c0_49] : memref<1x16x16x256xf32, #tpu.memory_space<vmem>>, vector<1x8x16x256xf32>
    %91 = vector.shape_cast %90 : vector<1x8x16x256xf32> to vector<8x16x256xf32>
    %92 = vector.shape_cast %88 : vector<128x256xf32> to vector<8x16x256xf32>
    %93 = arith.addf %92, %91 : vector<8x16x256xf32>
    %cst_50 = arith.constant 0.000000e+00 : f32
    %94 = vector.broadcast %cst_50 : f32 to vector<8x16x256xf32>
    %95 = arith.maximumf %93, %94 : vector<8x16x256xf32>
    %c0_51 = arith.constant 0 : index
    %c0_52 = arith.constant 0 : index
    %c0_53 = arith.constant 0 : index
    %c0_54 = arith.constant 0 : index
    %96 = vector.load %arg9[%c0_51, %c0_52, %c0_53, %c0_54] : memref<1x8x16x256xf32, #tpu.memory_space<vmem>>, vector<1x8x16x256xf32>
    %97 = vector.shape_cast %96 : vector<1x8x16x256xf32> to vector<8x16x256xf32>
    %98 = vector.shape_cast %95 : vector<8x16x256xf32> to vector<1x8x16x256xf32>
    tpu.vector_store %arg9[%c0_51, %c0_52, %c0_53, %c0_54], %98 {strides = array<i32>} : memref<1x8x16x256xf32, #tpu.memory_space<vmem>>, vector<1x8x16x256xf32>,
    return
  }
  func.func @transform_0(%arg0: i32, %arg1: i32) -> (i32, i32, i32, i32) {
    %c0_i32 = arith.constant 0 : i32
    %c0_i32_0 = arith.constant 0 : i32
    %c0_i32_1 = arith.constant 0 : i32
    %c0_i32_2 = arith.constant 0 : i32
    return %arg0, %c0_i32, %c0_i32_0, %c0_i32_1 : i32, i32, i32, i32
  }
  func.func @transform_1(%arg0: i32, %arg1: i32) -> (i32, i32) {
    %c0_i32 = arith.constant 0 : i32
    %c0_i32_0 = arith.constant 0 : i32
    %c0_i32_1 = arith.constant 0 : i32
    return %c0_i32, %c0_i32_0 : i32, i32
  }
  func.func @transform_2(%arg0: i32, %arg1: i32) -> (i32, i32) {
    %c0_i32 = arith.constant 0 : i32
    %c0_i32_0 = arith.constant 0 : i32
    %c0_i32_1 = arith.constant 0 : i32
    return %c0_i32, %c0_i32_0 : i32, i32
  }
  func.func @transform_3(%arg0: i32, %arg1: i32) -> (i32, i32) {
    %c0_i32 = arith.constant 0 : i32
    %c0_i32_0 = arith.constant 0 : i32
    %c0_i32_1 = arith.constant 0 : i32
    return %c0_i32, %c0_i32_0 : i32, i32
  }
  func.func @transform_4(%arg0: i32, %arg1: i32) -> (i32, i32) {
    %c0_i32 = arith.constant 0 : i32
    %c0_i32_0 = arith.constant 0 : i32
    %c0_i32_1 = arith.constant 0 : i32
    return %c0_i32, %c0_i32_0 : i32, i32
  }
  func.func @transform_5(%arg0: i32, %arg1: i32) -> (i32, i32) {
    %c0_i32 = arith.constant 0 : i32
    %c0_i32_0 = arith.constant 0 : i32
    %c0_i32_1 = arith.constant 0 : i32
    return %c0_i32, %c0_i32_0 : i32, i32
  }
  func.func @transform_6(%arg0: i32, %arg1: i32) -> (i32, i32) {
    %c0_i32 = arith.constant 0 : i32
    %c0_i32_0 = arith.constant 0 : i32
    %c0_i32_1 = arith.constant 0 : i32
    return %c0_i32, %c0_i32_0 : i32, i32
  }
  func.func @transform_7(%arg0: i32, %arg1: i32) -> (i32, i32, i32, i32) {
    %c0_i32 = arith.constant 0 : i32
    %c0_i32_0 = arith.constant 0 : i32
    %c0_i32_1 = arith.constant 0 : i32
    return %arg0, %arg1, %c0_i32, %c0_i32_0 : i32, i32, i32, i32
  }
}

</mosaic_0001>

<bundles_post_ra>
// kernel: tpu_custom_call.1
= control target key start
LH: loop header
LB: loop body
LE: loop exit
PB: predicated region body
PF: predicated region fallthrough
CT: control target
= control target key end

     0   :  { %s4920_s0 = inlined_call_operand.hbm [shape: f32[2,16,16,256], index: 0, kind: input, shape index: {}]   ;;  %s4921_s1 = inlined_call_operand.vmem [shape: bf16[256,64], index: 1, kind: input, shape index: {}]   ;;  %s4922_s2 = inlined_call_operand.vmem [shape: f32[1,64], index: 2, kind: input, shape index: {}]   ;;  %s4923_s3 = inlined_call_operand.vmem [shape: bf16[576,64], index: 3, kind: input, shape index: {}]   ;;  %s4924_s4 = inlined_call_operand.vmem [shape: f32[1,64], index: 4, kind: input, shape index: {}]   ;;  %s4925_s5 = inlined_call_operand.vmem [shape: bf16[64,256], index: 5, kind: input, shape index: {}]   ;;  %s4926_s6 = inlined_call_operand.vmem [shape: f32[1,256], index: 6, kind: input, shape index: {}]   ;;  %s4927_s7 = inlined_call_operand.hbm [shape: f32[2,16,16,256], index: 7, kind: output, shape index: {}]  }
   0x1   :  { %4960 = sst [smem:[#allocation31_spill]] %s4927_s7 }
   0x2   :  { %12 = vsyncpa [#allocation4], 0 }
   0x3   :  { %14 = vsyncpa [#allocation4 + $0x1], 0 }
   0x4   :  { %15 = vsyncpa [#allocation5], 0 }
   0x5   :  { %17 = vsyncpa [#allocation5 + $0x1], 0  ;;  %s3497_s24 = smov 0   ;;  %s3499_s25 = smov 0  }
   0x6   :  { %s3501_s26 = smov 0   ;;  %s3503_s27 = smov 0  }
   0x7   :  { %s3505_s28 = smov 0   ;;  %s3507_s29 = smov 0  }
   0x8   :  { %s3509_s30 = smov 0   ;;  %s3511_s8 = smov 0  }
   0x9   :  { %s3513_s9 = smov 0   ;;  %s3515_s10 = smov 0  }
   0xa   :  { %s3517_s11 = smov 0  }
   0xb LB: > { %4961 = sst [smem:[#allocation9_spill]] %s3439_s9  ;;  %s2639_s12 = sadd.s32 4294967295, %s3447_s11   ;;  %s3447_s11 = sphi %s3517_s11, %s23_s11   ;;  %s3443_s10 = sphi %s3515_s10, %s5037_s10   ;;  %s3439_s9 = sphi %s3513_s9, %s5036_s9   ;;  %s3435_s8 = sphi %s3511_s8, %s5035_s8   ;;  %s3431_s30 = sphi %s3509_s30, %s5034_s30   ;;  %s3427_s29 = sphi %s3507_s29, %s5043_s29   ;;  %s3423_s28 = sphi %s3505_s28, %s5042_s28   ;;  %s3419_s27 = sphi %s3503_s27, %s5041_s27   ;;  %s3415_s26 = sphi %s3501_s26, %s5040_s26   ;;  %s3411_s25 = sphi %s3499_s25, %s5039_s25   ;;  %s3407_s24 = sphi %s3497_s24, %s5038_s24  }
   0xc   : > { %4962 = sst [smem:[#allocation10_spill]] %s3443_s10  ;;  %s2640_s13 = sadd.s32 4294967294, %s3447_s11  }
   0xd   : > { %s32_s14 = sadd.s32 1, %s3439_s9  ;;  %s35_s15 = sadd.s32 1, %s3443_s10 }
   0xe   : > { %p33_p0 = scmp.ge.s32.totalorder %s32_s14, 2  ;;  %s42_s16 = sadd.s32 1, %s3427_s29 }
   0xf   : > { %p49_p1 = scmp.ne.s32.totalorder %s3427_s29, %s3423_s28  ;;  %p50_p2 = scmp.eq.s32.totalorder %s3447_s11, 0 }
  0x10   : > { %s5045_s14 = smov (%p33_p0, %s32_s14), 0  ;;  %s5047_s15 = smov (!%p33_p0, %s35_s15), %s3443_s10 }
  0x11   : > { %4963 = sst [smem:[#allocation11_spill]] %s5045_s14  ;;  %p3561_p3 = por %p50_p2, %p49_p1 }
  0x12   : > { %p55_p4 = scmp.ne.s32.totalorder %s3423_s28, %s3419_s27  ;;  %p37_p5 = scmp.ge.s32.totalorder %s5047_s15, 2 }
  0x13   : > { %p56_p6 = scmp.eq.s32.totalorder %s2639_s12, 0  ;;  %s192_s18 = ssub.s32 %s3439_s9, %s5045_s14 }
  0x14   : > { %s196_s19 = sadd.s32 1, %s3415_s26  ;;  %s5049_s15 = smov (%p37_p5, %s5047_s15), 0 }
  0x15   : > { %4965 = sst [smem:[#allocation12_spill]] %s5049_s15  ;;  %p3571_p7 = por %p56_p6, %p55_p4 }
  0x16   : > { %p206_p8 = scmp.ne.s32.totalorder %s3415_s26, %s3411_s25  ;;  %s39_s21 = ssub.s32 %s3443_s10, %s5049_s15 }
  0x17   : > { %p207_p9 = scmp.eq.s32.totalorder %s2639_s12, 3  ;;  %p40_p10 = scmp.eq.s32.totalorder %s39_s21, 0 }
  0x18   : > { %s193_s22 = sor.u32 %s192_s18, %s39_s21  ;;  %p212_p13 = scmp.ne.s32.totalorder %s3411_s25, %s3407_s24 }
  0x19   : > { %p194_p11 = scmp.eq.s32.totalorder %s193_s22, 0  ;;  %p3579_p12 = por %p207_p9, %p206_p8 }
  0x1a   : > { %s3584_s27 = scalar_select %p40_p10, %s3427_s29, %s42_s16  }
  0x1b   : > { %s4967_s23 = scalar_select %p3579_p12, 1, 0 }
  0x1c   : > { %s3587_s14 = scalar_select %p194_p11, %s3415_s26, %s196_s19  }
  0x1d   : > { %p213_p0 = scmp.eq.s32.totalorder %s2640_s13, 3  ;;  %p3128_p1 = scmp.lt.s32.totalorder %s3447_s11, 4 }
  0x1e   : > { %s251_s12 = sand.u32 1, %s3427_s29   ;;  %s2802_s21 = sshll.u32 %s3443_s10, 13 }
  0x1f   : > { %p3592_p2 = por %p213_p0, %p212_p13  ;;  %s2643_s18 = sshll.u32 %s251_s12, 9 }
  0x20   : > { %s3601_s7 = scalar_lea.hbm %s4920_s0, %s2802_s21  ;;  %s255_s16 = scalar_lea.vmem [#allocation3], %s2643_s18 }
  0x21   : > { %s4968_s9 = scalar_select %p3592_p2, 1, 0 }
  0x22   : > { %s262_s19 = sshll.u32 %s255_s16, 4  ;;  %p3607_p4 = pnand %p3128_p1, %p3561_p3  ;;  %s3603_s19 = int_to_ptr.vmem [resolvable:$true] %s262_s19 }
  0x23   : > { %s3612_s10 = scalar_lea.sflag [#allocation4], %s251_s12  ;;  %s3295_s15 = scalar_lea.hbm %s3601_s7, 8192 }
  0x24   : > { %p3296_p6 = scmp.ne.s32.totalorder %s3601_s7, %s3295_s15  ;;  %p3297_p8 = pneg %p3607_p4 }
  0x25   : > { %s3300_s17 = scalar_lea.hbm %s4920_s0, 16384  ;;  %p3301_p3 = scmp.lt.u32.totalorder %s3601_s7, %s4920_s0 }
  0x26   : > { %p3298_p9 = pnand %p3297_p8, %p3296_p6  ;;  %p3302_p11 = scmp.lt.u32.totalorder %s3300_s17, %s3295_s15 }
  0x27   : > { %p3304_p0 = scmp.lt.u32.totalorder %s3295_s15, %s3601_s7 }
  0x28   : > { %p3299_p10 = pneg %p3298_p9  ;;  %p3303_p13 = por %p3302_p11, %p3301_p3 }
  0x2a   : > { %p3305_p1 = por %p3304_p0, %p3303_p13 }
  0x2c   : > { %p3306_p5 = pnand %p3305_p1, %p3299_p10 }
  0x2e   : > { %3309 = shalt.err (!%p3306_p5)
}
  0x2f   : > { %s3310_s12 = scalar_lea.vmem %s3603_s19, 8192  ;;  %s3449_s18 = smov [#allocation3]  }
  0x30   : > { %p3311_p6 = scmp.ne.s32.totalorder %s3603_s19, %s3310_s12  ;;  %s3315_s21 = sshll.u32 %s3449_s18, 4  ;;  %s3316_s21 = int_to_ptr.vmem [resolvable:$false] %s3315_s21 }
  0x31   : > { %s3317_s22 = scalar_lea.vmem %s3316_s21, 16384  ;;  %p3318_p12 = scmp.lt.s32.totalorder %s3603_s19, %s3316_s21 }
  0x32   : > { %p3313_p9 = pnand %p3311_p6, %p3297_p8  ;;  %p3319_p3 = scmp.lt.s32.totalorder %s3317_s22, %s3310_s12 }
  0x34   : > { %p3314_p2 = pneg %p3313_p9  ;;  %p3320_p11 = por %p3319_p3, %p3318_p12 }
  0x36   : > { %p3321_p13 = pnand %p3320_p11, %p3314_p2 }
  0x38   : > { %3324 = shalt.err (!%p3321_p13)
}
  0x39   : > { %s3450_s15 = smov 256   ;;  %s3451_s17 = smov 16  }
  0x3a   : > { %3123 = dma.hbm_to_vmem [thread:$0]  (!%p3607_p4), %s3601_s7, 8192, %s3603_s19, %s3612_s10, %s3450_s15, %s3450_s15, %s3451_s17  }
  0x3b   : > { %p270_p5 = scmp.lt.s32.totalorder %s3447_s11, 5  ;;  %p4970_p8 = scmp.ge.s32.totalorder %s3447_s11, 1 }
  0x3d   : > { %p271_p10 = pnand %p4970_p8, %p270_p5 }
  0x3f   : > { %274 = sbr.rel (%p271_p10) target bundleno = 1060 (0x424), region = 48 }
  0x46   : > { %s276_s16 = sand.u32 1, %s3423_s28  }
  0x47   : > { %s2647_s12 = sshll.u32 %s276_s16, 9  ;;  %s277_s18 = scalar_lea.sflag [#allocation4], %s276_s16 }
  0x48   : > { %s3644_s21 = scalar_lea.vmem [#allocation3], %s2647_s12 }
  0x49   : > { %3398 = dma.done.wait (%p3571_p7), %s277_s18, 8192  }
  0x4a   : > { %3400 = vsyncadd (%p3571_p7), %s277_s18, 4294959104  ;;  %s2649_s22 = sshll.u32 %s3431_s30, 3  ;;  %v3654_v0 = vld [vmem:[%s4921_s1 + $0x40] sm:$0xff]   ;;  %v3666_v2 = vld [vmem:[%s4921_s1 + $0x48] sm:$0xff]   ;;  %s2804_s20 = sshll.u32 %s3431_s30, 8  ;;  %vm838_vm0 = vcmask 519171  }
  0x4b   : > { %s2669_s10 = sadd.s32 4294967295, %s2649_s22  ;;  %v3659_v1 = vld [vmem:[%s4921_s1] sm:$0xff]   ;;  %2828 = vmatprep.subr.bf16.mxu0 %v3654_v0  ;;  %2892 = vmatprep.subr.bf16.mxu1 %v3654_v0  ;;  %v3673_v3 = vld [vmem:[%s4921_s1 + $0x8] sm:$0xff]   ;;  %v3680_v4 = vld [vmem:[%s4921_s1 + $0x50] sm:$0xff]   ;;  %s616_s16 = sadd.s32 8, %s2649_s22  ;;  %vm871_vm4 = vcmask 516096  }
  0x4c   : > { %2829 = vmatpush3.bf16.msra.mxu0 %v3659_v1  ;;  %2893 = vmatpush3.bf16.msra.mxu1 %v3659_v1  ;;  %p614_p7 = scmp.gt.s32.totalorder %s2669_s10, 0  ;;  %v3687_v5 = vld [vmem:[%s4921_s1 + $0x10] sm:$0xff]   ;;  %v3694_v6 = vld [vmem:[%s4921_s1 + $0x58] sm:$0xff]   ;;  %v3709_v8 = vld [vmem:[%s4921_s1 + $0x60] sm:$0xff]   ;;  %s3712_s22 = scalar_lea.vmem %s3644_s21, %s2804_s20 [#allocation3]  ;;  %vm839_vm1 = vsmask.f32 7950 }
  0x4d   : > { %2830 = vmatprep.subr.bf16.mxu0 %v3666_v2  ;;  %2894 = vmatprep.subr.bf16.mxu1 %v3666_v2  ;;  %v3702_v7 = vld [vmem:[%s4921_s1 + $0x18] sm:$0xff]   ;;  %p617_p12 = scmp.lt.s32.totalorder %s616_s16, 15  ;;  %v3722_v9 = vld [vmem:[%s4921_s1 + $0x20] sm:$0xff]   ;;  %v3729_v10 = vld [vmem:[%s4921_s1 + $0x68] sm:$0xff]   ;;  %vm872_vm3 = vsmask.f32 256 }
  0x4e   : > { %s5051_s10 = smov (!%p614_p7, %s2669_s10), 0  ;;  %v351_v11 = vld [vmem:[%s3712_s22 + $0x8] sm:$0xff]  ;;  %v353_v12 = vld [vmem:[%s3712_s22 + $0x18] sm:$0xff]  ;;  %v3748_v18 = vld [vmem:[%s4921_s1 + $0x70] sm:$0xff]   ;;  %p723_p2 = scmp.gt.s32.totalorder %s3431_s30, 0  ;;  %vm800_vm6 = vcmask 519168  }
  0x4f   : > { %s2805_s13 = sshll.u32 %s5051_s10, 5  ;;  %v383_v13 = vpack.c.bf16 %v353_v12, %v351_v11  ;;  %s5053_s16 = smov (!%p617_p12, %s616_s16), 15  ;;  %v3741_v17 = vld [vmem:[%s4921_s1 + $0x28] sm:$0xff]   ;;  %v3755_v19 = vld [vmem:[%s4921_s1 + $0x30] sm:$0xff]   ;;  %v3762_v20 = vld [vmem:[%s4921_s1 + $0x78] sm:$0xff]   ;;  %vm1471_vm14 = vcmask 523264  }
  0x50   : > { %2831 = vmatpush3.bf16.msra.mxu0 %v3673_v3  ;;  %2895 = vmatpush3.bf16.msra.mxu1 %v3673_v3  ;;  %s3715_s15 = scalar_lea.vmem %s3644_s21, %s2805_s13 [#allocation3]  ;;  %s2806_s10 = sshll.u32 %s5053_s16, 5  ;;  %v3770_v21 = vld [vmem:[%s4921_s1 + $0x38] sm:$0xff]   ;;  %v350_v22 = vld [vmem:[%s3712_s22] sm:$0xff]  ;;  %v352_v23 = vld [vmem:[%s3712_s22 + $0x10] sm:$0xff]  ;;  %vm944_vm8 = vsmask.f32 4368 }
  0x51   : > { %2832 = vmatprep.subr.bf16.mxu0 %v3680_v4  ;;  %2896 = vmatprep.subr.bf16.mxu1 %v3680_v4  ;;  %v623_v14 = vld [vmem:[%s3715_s15 + $0x8] sm:$0xff]  ;;  %v625_v15 = vld [vmem:[%s3715_s15 + $0x18] sm:$0xff]  ;;  %s3765_s16 = scalar_lea.vmem %s3644_s21, %s2806_s10 [#allocation3]  ;;  %v622_v24 = vld [vmem:[%s3715_s15] sm:$0xff]  ;;  %v382_v30 = vpack.c.bf16 %v352_v23, %v350_v22  ;;  %p729_p4 = scmp.lt.s32.totalorder %s3431_s30, 1  ;;  %vm1122_vm10 = vsmask.f32 3328 }
  0x52   : > { %v627_v16 = vpack.c.bf16 %v625_v15, %v623_v14  ;;  %532 = vmatprep.mubr.bf16.mxu0 %v383_v13  ;;  %v624_v25 = vld [vmem:[%s3715_s15 + $0x10] sm:$0xff]  ;;  %v355_v26 = vld [vmem:[%s3712_s22 + $0x28] sm:$0xff]  ;;  %v357_v27 = vld [vmem:[%s3712_s22 + $0x38] sm:$0xff]  ;;  %s724_s7 = scalar_select %p723_p2, 1, 0 }
  0x53   : > { %v675_v28 = vld [vmem:[%s3765_s16 + $0x8] sm:$0xff]  ;;  %v677_v29 = vld [vmem:[%s3765_s16 + $0x18] sm:$0xff]  ;;  %v626_v31 = vpack.c.bf16 %v624_v25, %v622_v24  ;;  %v385_v32 = vpack.c.bf16 %v357_v27, %v355_v26  ;;  %v354_v34 = vld [vmem:[%s3712_s22 + $0x20] sm:$0xff]  ;;  %s3976_s19 = scalar_select %p729_p4, 1, 0 }
  0x54   : > { %2833 = vmatpush3.bf16.msra.mxu0 %v3687_v5  ;;  %2897 = vmatpush3.bf16.msra.mxu1 %v3687_v5  ;;  %v679_v33 = vpack.c.bf16 %v677_v29, %v675_v28  ;;  %v356_v35 = vld [vmem:[%s3712_s22 + $0x30] sm:$0xff]  ;;  %v359_v36 = vld [vmem:[%s3712_s22 + $0x48] sm:$0xff]  ;;  %v361_v37 = vld [vmem:[%s3712_s22 + $0x58] sm:$0xff]  ;;  %s3452_s13 = smov 64   ;;  %vm1123_vm11 = vsmask.f32 7440 }
  0x55   : > { %2834 = vmatprep.subr.bf16.mxu0 %v3694_v6  ;;  %2898 = vmatprep.subr.bf16.mxu1 %v3694_v6  ;;  %v384_v38 = vpack.c.bf16 %v356_v35, %v354_v34  ;;  %v387_v39 = vpack.c.bf16 %v361_v37, %v359_v36  ;;  %v358_v40 = vld [vmem:[%s3712_s22 + $0x40] sm:$0xff]  ;;  %v360_v41 = vld [vmem:[%s3712_s22 + $0x50] sm:$0xff]  ;;  %v363_v42 = vld [vmem:[%s3712_s22 + $0x68] sm:$0xff]  ;;  %s308_s21 = sand.u32 1, %s3411_s25   ;;  %s2827_s17 = sshll.u32 %s3431_s30, 5 }
  0x56   : > { %660 = vmatprep.mubr.bf16.mxu1 %v627_v16  ;;  %v365_v43 = vld [vmem:[%s3712_s22 + $0x78] sm:$0xff]  ;;  %v386_v44 = vpack.c.bf16 %v360_v41, %v358_v40  ;;  %v362_v46 = vld [vmem:[%s3712_s22 + $0x60] sm:$0xff]  ;;  %v364_v47 = vld [vmem:[%s3712_s22 + $0x70] sm:$0xff]  ;;  %s2648_s15 = sshll.u32 %s308_s21, 8  ;;  %s2798_s20 = sshll.u32 %s3435_s8, 6 }
  0x57   : > { %v389_v45 = vpack.c.bf16 %v365_v43, %v363_v42  ;;  %v367_v48 = vld [vmem:[%s3712_s22 + $0x88] sm:$0xff]  ;;  %v369_v49 = vld [vmem:[%s3712_s22 + $0x98] sm:$0xff]  ;;  %v388_v50 = vpack.c.bf16 %v364_v47, %v362_v46  ;;  %v366_v52 = vld [vmem:[%s3712_s22 + $0x80] sm:$0xff]  ;;  %s4757_s10 = scalar_lea.vmem [#allocation6], %s2648_s15  ;;  %s5030_s12 = sld [smem:[#allocation31_spill]] }
  0x58   : > { %2835 = vmatpush3.bf16.msra.mxu0 %v3702_v7  ;;  %2899 = vmatpush3.bf16.msra.mxu1 %v3702_v7  ;;  %v391_v51 = vpack.c.bf16 %v369_v49, %v367_v48  ;;  %v368_v53 = vld [vmem:[%s3712_s22 + $0x90] sm:$0xff]  ;;  %v674_v54 = vld [vmem:[%s3765_s16] sm:$0xff]  ;;  %v371_v56 = vld [vmem:[%s3712_s22 + $0xa8] sm:$0xff]  ;;  %s2546_s30 = sshll.u32 %s4757_s10, 4  ;;  %p5031_p1 = scmp.ne.s32.totalorder %s4967_s23, 0  ;;  %s4847_s30 = int_to_ptr.vmem [resolvable:$true] %s2546_s30 }
  0x59   : > { %2836 = vmatprep.subr.bf16.mxu0 %v3709_v8  ;;  %2900 = vmatprep.subr.bf16.mxu1 %v3709_v8  ;;  %v676_v55 = vld [vmem:[%s3765_s16 + $0x10] sm:$0xff]  ;;  %v373_v57 = vld [vmem:[%s3712_s22 + $0xb8] sm:$0xff]  ;;  %v390_v58 = vpack.c.bf16 %v368_v53, %v366_v52  ;;  %v370_v61 = vld [vmem:[%s3712_s22 + $0xa0] sm:$0xff]  ;;  %s4859_s16 = scalar_lea.sflag [#allocation5], %s308_s21  ;;  %s3454_s15 = smov [#allocation6]  }
  0x5a   : > { %v678_v59 = vpack.c.bf16 %v676_v55, %v674_v54  ;;  %v393_v60 = vpack.c.bf16 %v373_v57, %v371_v56  ;;  %v372_v62 = vld [vmem:[%s3712_s22 + $0xb0] sm:$0xff]  ;;  %v375_v63 = vld [vmem:[%s3712_s22 + $0xc8] sm:$0xff]  ;;  %vm3830_vm2 = vmand %vm838_vm0, %vm839_vm1 }
  0x5b   : > { %v844_v13 = vld [vmem:[#allocation2 + $0x18] sm:$0x8]  ;;  %v847_v15 = vld [vmem:[#allocation2 + $0x2c] sm:$0x8]  ;;  %vm3839_vm5 = vmand %vm871_vm4, %vm872_vm3 }
  0x5c   : > { %2837 = vmatpush3.bf16.msra.mxu0 %v3722_v9  ;;  %2901 = vmatpush3.bf16.msra.mxu1 %v3722_v9  ;;  %v845_v14 = vsel %vm3830_vm2, 0, %v844_v13  ;;  %v848_v16 = vsel %vm3830_vm2, 0, %v847_v15  ;;  %v850_v22 = vld [vmem:[#allocation2 + $0x40] sm:$0x8]  ;;  %v853_v24 = vld [vmem:[#allocation2 + $0x54] sm:$0x8]  ;;  %vm4015_vm9 = vmor %vm872_vm3, %vm944_vm8 }
  0x5d   : > { %2838 = vmatprep.subr.bf16.mxu0 %v3729_v10  ;;  %2902 = vmatprep.subr.bf16.mxu1 %v3729_v10  ;;  %846 = vst [vmem:[#allocation2 + $0x18] sm:$0x8] %v845_v14  ;;  %849 = vst [vmem:[#allocation2 + $0x2c] sm:$0x8] %v848_v16  ;;  %v851_v23 = vsel %vm3830_vm2, 0, %v850_v22  ;;  %v854_v25 = vsel %vm3830_vm2, 0, %v853_v24 }
  0x5e   : > { %852 = vst [vmem:[#allocation2 + $0x40] sm:$0x8] %v851_v23  ;;  %855 = vst [vmem:[#allocation2 + $0x54] sm:$0x8] %v854_v25  ;;  %v886_v26 = vld [vmem:[#allocation2 + $0x60] sm:$0x1] }
  0x5f   : > { %v887_v27 = vsel %vm3839_vm5, 0, %v886_v26  ;;  %v856_v28 = vld [vmem:[#allocation2 + $0x68] sm:$0x8]  ;;  %v892_v34 = vld [vmem:[#allocation2 + $0x88] sm:$0x1]  ;;  %v3245_v46 = vld [vmem:[%s4923_s3 + $0x40] sm:$0xff]  }
  0x60   : > { %2839 = vmatpush3.bf16.msra.mxu0 %v3741_v17  ;;  %2903 = vmatpush3.bf16.msra.mxu1 %v3741_v17  ;;  %888 = vst [vmem:[#allocation2 + $0x60] sm:$0x1] %v887_v27  ;;  %v857_v29 = vsel %vm3830_vm2, 0, %v856_v28  ;;  %v893_v35 = vsel %vm3839_vm5, 0, %v892_v34  ;;  %v862_v36 = vld [vmem:[#allocation2 + $0x90] sm:$0x8]  ;;  %vm4202_vm13 = vmor %vm1122_vm10, %vm1123_vm11 }
  0x61   : > { %2840 = vmatprep.subr.bf16.mxu0 %v3748_v18  ;;  %2904 = vmatprep.subr.bf16.mxu1 %v3748_v18  ;;  %858 = vst [vmem:[#allocation2 + $0x68] sm:$0x8] %v857_v29  ;;  %894 = vst [vmem:[#allocation2 + $0x88] sm:$0x1] %v893_v35  ;;  %v863_v37 = vsel %vm3830_vm2, 0, %v862_v36  ;;  %v3246_v47 = vld [vmem:[%s4923_s3] sm:$0xff]  }
  0x62   : > { %864 = vst [vmem:[#allocation2 + $0x90] sm:$0x8] %v863_v37  ;;  %v865_v42 = vld [vmem:[#allocation2 + $0xa4] sm:$0x8]  ;;  %v889_v48 = vld [vmem:[#allocation2 + $0x74] sm:$0x1] }
  0x63   : > { %v866_v43 = vsel %vm3830_vm2, 0, %v865_v42  ;;  %v890_v49 = vsel %vm3839_vm5, 0, %v889_v48  ;;  %v3247_v52 = vld [vmem:[%s4923_s3 + $0x48] sm:$0xff]   ;;  %v3249_v54 = vld [vmem:[%s4923_s3 + $0x50] sm:$0xff]   ;;  %v3253_v56 = vld [vmem:[%s4923_s3 + $0x58] sm:$0xff]  }
  0x64   : > { %2841 = vmatpush3.bf16.msra.mxu0 %v3755_v19  ;;  %2905 = vmatpush3.bf16.msra.mxu1 %v3755_v19  ;;  %867 = vst [vmem:[#allocation2 + $0xa4] sm:$0x8] %v866_v43  ;;  %891 = vst [vmem:[#allocation2 + $0x74] sm:$0x1] %v890_v49  ;;  %v3248_v53 = vld [vmem:[%s4923_s3 + $0x8] sm:$0xff]   ;;  %v3250_v55 = vld [vmem:[%s4923_s3 + $0x10] sm:$0xff]  }
  0x65   : > { %2842 = vmatprep.subr.bf16.mxu0 %v3762_v20  ;;  %2906 = vmatprep.subr.bf16.mxu1 %v3762_v20  ;;  %v3254_v57 = vld [vmem:[%s4923_s3 + $0x18] sm:$0xff]  }
  0x67   : > { %v923_v37 = vld [vmem:[#allocation2 + $0x60] sm:$0xf] }
  0x68   : > { %2843 = vmatpush3.bf16.msra.mxu0 %v3770_v21  ;;  %2907 = vmatpush3.bf16.msra.mxu1 %v3770_v21 }
  0x69   : > { %2914 = vmatprep.subr.bf16.mxu1 %v3654_v0  ;;  %v377_v0 = vld [vmem:[%s3712_s22 + $0xd8] sm:$0xff]  ;;  %2936 = vmatprep.subr.bf16.mxu0 %v3245_v46 }
  0x6b   : > { %533 = vmatmul.mubr.bf16.vlgmr.msra.gmra.mrb[0].mxu0 %v382_v30  ;;  %661 = vmatmul.mubr.bf16.vlgmr.msra.gmra.mrb[0].mxu1 %v626_v31  ;;  %v874_v30 = vld [vmem:[#allocation2 + $0x10] sm:$0x1]  ;;  %v859_v31 = vld [vmem:[#allocation2 + $0x7c] sm:$0x8] }
  0x6c   : > { %540 = vmatprep.mubr.bf16.mxu0 %v385_v32  ;;  %2915 = vmatpush3.bf16.msra.mxu1 %v3659_v1  ;;  %v392_v1 = vpack.c.bf16 %v372_v62, %v370_v61  ;;  %v875_v32 = vsel %vm3839_vm5, 0, %v874_v30  ;;  %v3258_v61 = vld [vmem:[%s4923_s3 + $0x28] sm:$0xff]   ;;  %v3259_v62 = vld [vmem:[%s4923_s3 + $0x70] sm:$0xff]  }
  0x6d   : > { %2916 = vmatprep.subr.bf16.mxu1 %v3666_v2  ;;  %712 = vmatprep.mubr.bf16.mxu1 %v679_v33  ;;  %v395_v2 = vpack.c.bf16 %v377_v0, %v375_v63  ;;  %v860_v33 = vsel %vm3830_vm2, 0, %v859_v31  ;;  %876 = vst [vmem:[#allocation2 + $0x10] sm:$0x1] %v875_v32  ;;  %v3260_v63 = vld [vmem:[%s4923_s3 + $0x30] sm:$0xff]   ;;  %v3261_v0 = vld [vmem:[%s4923_s3 + $0x78] sm:$0xff]  }
  0x6e   : > { %861 = vst [vmem:[#allocation2 + $0x7c] sm:$0x8] %v860_v33  ;;  %2937 = vmatpush3.bf16.msra.mxu0 %v3246_v47  ;;  %v932_v47 = vld [vmem:[#allocation2 + $0x90] sm:$0xf] }
  0x6f   : > { %2938 = vmatprep.subr.bf16.mxu0 %v3247_v52 }
  0x70   : > { %2917 = vmatpush3.bf16.msra.mxu1 %v3673_v3  ;;  %v374_v3 = vld [vmem:[%s3712_s22 + $0xc0] sm:$0xff] }
  0x71   : > { %2918 = vmatprep.subr.bf16.mxu1 %v3680_v4  ;;  %v376_v4 = vld [vmem:[%s3712_s22 + $0xd0] sm:$0xff] }
  0x72   : > { %2939 = vmatpush3.bf16.msra.mxu0 %v3248_v53 }
  0x73   : > { %541 = vmatmul.mubr.bf16.gmra.mrb[4].mxu0 %v384_v38  ;;  %v883_v38 = vld [vmem:[#allocation2 + $0x4c] sm:$0x1]  ;;  %2940 = vmatprep.subr.bf16.mxu0 %v3249_v54 }
  0x74   : > { %548 = vmatprep.mubr.bf16.mxu0 %v387_v39  ;;  %2919 = vmatpush3.bf16.msra.mxu1 %v3687_v5  ;;  %v379_v5 = vld [vmem:[%s3712_s22 + $0xe8] sm:$0xff]  ;;  %v895_v39 = vld [vmem:[#allocation2 + $0x9c] sm:$0x1]  ;;  %v884_v40 = vsel %vm3839_vm5, 0, %v883_v38 }
  0x75   : > { %2920 = vmatprep.subr.bf16.mxu1 %v3694_v6  ;;  %v381_v6 = vld [vmem:[%s3712_s22 + $0xf8] sm:$0xff]  ;;  %v896_v41 = vsel %vm3839_vm5, 0, %v895_v39  ;;  %885 = vst [vmem:[#allocation2 + $0x4c] sm:$0x1] %v884_v40  ;;  %v924_v39 = vld [vmem:[#allocation2 + $0x68] sm:$0xf] }
  0x76   : > { %897 = vst [vmem:[#allocation2 + $0x9c] sm:$0x1] %v896_v41  ;;  %2941 = vmatpush3.bf16.msra.mxu0 %v3250_v55  ;;  %v928_v40 = vld [vmem:[#allocation2 + $0x7c] sm:$0xf]  ;;  %v931_v41 = vld [vmem:[#allocation2 + $0x88] sm:$0xf] }
  0x77   : > { %2942 = vmatprep.subr.bf16.mxu0 %v3253_v56 }
  0x78   : > { %2921 = vmatpush3.bf16.msra.mxu1 %v3702_v7  ;;  %v394_v7 = vpack.c.bf16 %v376_v4, %v374_v3  ;;  %v912_v3 = vld [vmem:[#allocation2 + $0x2c] sm:$0xf] }
  0x79   : > { %2922 = vmatprep.subr.bf16.mxu1 %v3709_v8  ;;  %v397_v8 = vpack.c.bf16 %v381_v6, %v379_v5  ;;  %v3927_v6 = vld [vmem:[%s4922_s2] ss:$0 sm:$0xff] }
  0x7a   : > { %2943 = vmatpush3.bf16.msra.mxu0 %v3254_v57  ;;  %v1057_v57 = vshrl.u32 %v924_v39, 16 }
  0x7b   : > { %549 = vmatmul.mubr.bf16.gmra.mrb[8].mxu0 %v386_v44  ;;  %v841_v44 = vld [vmem:[#allocation2 + $0x4] sm:$0x8] }
  0x7c   : > { %556 = vmatprep.mubr.bf16.mxu0 %v389_v45  ;;  %2923 = vmatpush3.bf16.msra.mxu1 %v3722_v9  ;;  %v378_v9 = vld [vmem:[%s3712_s22 + $0xe0] sm:$0xff]  ;;  %v842_v45 = vsel %vm3830_vm2, 0, %v841_v44 }
  0x7d   : > { %2924 = vmatprep.subr.bf16.mxu1 %v3729_v10  ;;  %v380_v10 = vld [vmem:[%s3712_s22 + $0xf0] sm:$0xff]  ;;  %843 = vst [vmem:[#allocation2 + $0x4] sm:$0x8] %v842_v45 }
  0x7e   : > { %v396_v11 = vpack.c.bf16 %v380_v10, %v378_v9 }
  0x80   : > { %2925 = vmatpush3.bf16.msra.mxu1 %v3741_v17 }
  0x81   : > { %2926 = vmatprep.subr.bf16.mxu1 %v3748_v18  ;;  %v877_v18 = vld [vmem:[#allocation2 + $0x24] sm:$0x1] }
  0x83   : > { %557 = vmatmul.mubr.bf16.gmra.mrb[12].mxu0 %v388_v50  ;;  %v898_v50 = vld [vmem:[#allocation2 + $0xb0] sm:$0x1] }
  0x84   : > { %564 = vmatprep.mubr.bf16.mxu0 %v391_v51  ;;  %2927 = vmatpush3.bf16.msra.mxu1 %v3755_v19  ;;  %v878_v19 = vsel %vm3839_vm5, 0, %v877_v18  ;;  %v899_v51 = vsel %vm3839_vm5, 0, %v898_v50 }
  0x85   : > { %2928 = vmatprep.subr.bf16.mxu1 %v3762_v20  ;;  %879 = vst [vmem:[#allocation2 + $0x24] sm:$0x1] %v878_v19  ;;  %v880_v20 = vld [vmem:[#allocation2 + $0x38] sm:$0x1]  ;;  %900 = vst [vmem:[#allocation2 + $0xb0] sm:$0x1] %v899_v51 }
  0x86   : > { %v916_v19 = vld [vmem:[#allocation2 + $0x40] sm:$0xf]  ;;  %v1191_v51 = vshll.u32 %v923_v37, 16 }
  0x87   : > { %v1013_v30 = vshrl.u32 %v916_v19, 16 }
  0x88   : > { %2929 = vmatpush3.bf16.msra.mxu1 %v3770_v21  ;;  %v881_v21 = vsel %vm3839_vm5, 0, %v880_v20  ;;  %v920_v20 = vld [vmem:[#allocation2 + $0x54] sm:$0xf] }
  0x89   : > { %882 = vst [vmem:[#allocation2 + $0x38] sm:$0x1] %v881_v21  ;;  %v1035_v31 = vshrl.u32 %v920_v20, 16 }
  0x8b   : > { %565 = vmatmul.mubr.bf16.gmra.mrb[16].mxu0 %v390_v58  ;;  %713 = vmatmul.mubr.bf16.vlgmr.msra.gmra.mrb[4].mxu1 %v678_v59  ;;  %v3255_v58 = vld [vmem:[%s4923_s3 + $0x60] sm:$0xff]  }
  0x8c   : > { %572 = vmatprep.mubr.bf16.mxu0 %v393_v60  ;;  %v3256_v59 = vld [vmem:[%s4923_s3 + $0x20] sm:$0xff]   ;;  %2944 = vmatprep.subr.bf16.mxu0 %v3255_v58  ;;  %v3257_v60 = vld [vmem:[%s4923_s3 + $0x68] sm:$0xff]   ;;  %v939_v22 = vld [vmem:[#allocation2 + $0xb0] sm:$0xf] }
  0x8d   : > { %2945 = vmatpush3.bf16.msra.mxu0 %v3256_v59  ;;  %v911_v38 = vld [vmem:[#allocation2 + $0x24] sm:$0xf] }
  0x8e   : > { %2946 = vmatprep.subr.bf16.mxu0 %v3257_v60  ;;  %v1149_v52 = vshll.u32 %v911_v38, 16  ;;  %v1079_v60 = vshrl.u32 %v928_v40, 16  ;;  %v1269_v38 = vshll.u32 %v939_v22, 16 }
  0x90   : > { %v915_v13 = vld [vmem:[#allocation2 + $0x38] sm:$0xf] }
  0x91   : > { %2947 = vmatpush3.bf16.msra.mxu0 %v3258_v61  ;;  %v1163_v32 = vshll.u32 %v915_v13, 16  ;;  %v1101_v61 = vshrl.u32 %v932_v47, 16  ;;  %v3962_v13 = vrot.slane %v1057_v57, 11 }
  0x92   : > { %2948 = vmatprep.subr.bf16.mxu0 %v3259_v62  ;;  %v1219_v62 = vshll.u32 %v931_v41, 16 }
  0x93   : > { %573 = vmatmul.mubr.bf16.gmra.mrb[20].mxu0 %v392_v1  ;;  %v3262_v1 = vld [vmem:[%s4923_s3 + $0x38] sm:$0xff]   ;;  %v3943_v50 = vrot.slane %v1163_v32, 5 }
  0x94   : > { %580 = vmatprep.mubr.bf16.mxu0 %v395_v2  ;;  %v908_v2 = vld [vmem:[#allocation2 + $0x18] sm:$0xf] }
  0x95   : > { %2949 = vmatpush3.bf16.msra.mxu0 %v3260_v63  ;;  %v969_v4 = vshrl.u32 %v908_v2, 16  ;;  %v3953_v2 = vrot.slane %v1035_v31, 11 }
  0x96   : > { %2950 = vmatprep.subr.bf16.mxu0 %v3261_v0 }
  0x97   : > { %v3933_v24 = vrot.slane %v969_v4, 11  ;;  %v3958_v4 = vrot.slane %v1149_v52, 5 }
  0x99   : > { %2951 = vmatpush3.bf16.msra.mxu0 %v3262_v1  ;;  %v3951_v1 = vrot.slane %v1013_v30, 11 }
  0x9b   : > { %581 = vmatmul.mubr.bf16.gmra.mrb[24].mxu0 %v394_v7 }
  0x9c   : > { %588 = vmatprep.mubr.bf16.mxu0 %v397_v8  ;;  %v725_v8 = vstv %s724_s7  ;;  %s3325_s7 = scalar_lea.vmem %s4847_s30, 4096 }
  0x9d   : > { %vm3929_vm7 = vcmp.eq.s32.totalorder %v725_v8, 1  ;;  %p3326_p0 = scmp.ne.s32.totalorder %s4847_s30, %s3325_s7 }
  0x9f   : > { %p3327_p6 = pnand %p3326_p0, %p5031_p1 }
  0xa1   : > { %p3328_p9 = pneg %p3327_p6 }
  0xa3   : > { %589 = vmatmul.mubr.bf16.gmra.mrb[28].mxu0 %v396_v11  ;;  %v991_v11 = vshrl.u32 %v912_v3, 16  ;;  %v3956_v3 = vrot.slane %v1191_v51, 5 }
  0xa5   : > { %v3937_v29 = vrot.slane %v991_v11, 11  ;;  %v935_v11 = vld [vmem:[#allocation2 + $0x9c] sm:$0xf] }
 0x13e   : > { %v2844_v5 = vpop.f32.mrb[0].mxu0  ;;  %v2908_v7 = vpop.f32.mrb[0].mxu1 }
 0x13f   : > { %v2845_v9 = vpop.f32.mrb[1].mxu0  ;;  %v2909_v10 = vpop.f32.mrb[1].mxu1 }
 0x140   : > { %v2846_v14 = vadd.f32 %v2845_v9, %v2844_v5  ;;  %v2847_v15 = vpop.f32.mrb[2].mxu0  ;;  %v2910_v16 = vadd.f32 %v2909_v10, %v2908_v7  ;;  %v2911_v18 = vpop.f32.mrb[2].mxu1  ;;  %v919_v5 = vld [vmem:[#allocation2 + $0x4c] sm:$0xf]  ;;  %v907_v7 = vld [vmem:[#allocation2 + $0x10] sm:$0xf] }
 0x141   : > { %v2848_v21 = vpop.f32.mrb[3].mxu0  ;;  %v2912_v23 = vpop.f32.mrb[3].mxu1  ;;  %v936_v10 = vld [vmem:[#allocation2 + $0xa4] sm:$0xf]  ;;  %v1177_v30 = vshll.u32 %v919_v5, 16 }
 0x142   : > { %v535_v25 = vadd.f32 %v2846_v14, %v3927_v6  ;;  %v2849_v26 = vadd.f32 %v2848_v21, %v2847_v15  ;;  %v663_v27 = vadd.f32 %v2910_v16, %v3927_v6  ;;  %v2913_v28 = vadd.f32 %v2912_v23, %v2911_v18  ;;  %v904_v18 = vld [vmem:[#allocation2 + $0x4] sm:$0xf]  ;;  %v927_v23 = vld [vmem:[#allocation2 + $0x74] sm:$0xf] }
 0x143   : > { %v3964_v14 = vrot.slane %v1079_v60, 11  ;;  %v3966_v15 = vrot.slane %v1101_v61, 11  ;;  %v3968_v16 = vrot.slane %v1219_v62, 5  ;;  %v1205_v39 = vshll.u32 %v927_v23, 16 }
 0x144   : > { %v597_v33 = vmax.f32 %v535_v25, 0.0  ;;  %v538_v34 = vadd.f32 %v2849_v26, %v3927_v6  ;;  %v669_v35 = vmax.f32 %v663_v27, 0.0  ;;  %v666_v36 = vadd.f32 %v2913_v28, %v3927_v6 }
 0x145   : > { %v1238_v27 = vshrl.u32 %v936_v10, 16  ;;  %v1233_v28 = vshll.u32 %v935_v11, 16  ;;  %v947_v40 = vshrl.u32 %v904_v18, 16 }
 0x146   : > { %v2807_v42 = vpack.c.bf16 %v597_v33, %v597_v33  ;;  %v598_v43 = vmax.f32 %v538_v34, 0.0  ;;  %v727_v44 = vsel %vm3929_vm7, %v669_v35, 0.0  ;;  %v670_v45 = vmax.f32 %v666_v36, 0.0  ;;  %v2850_v46 = vpop.f32.mrb[4].mxu0 }
 0x147   : > { %v2823_v48 = vpack.c.bf16 %v727_v44, %v727_v44  ;;  %v2851_v49 = vpop.f32.mrb[5].mxu0  ;;  %v1135_v35 = vshll.u32 %v907_v7, 16  ;;  %v3988_v47 = vrot.slane %v1233_v28, 5  ;;  %v4011_v61 = vrot.slane %v947_v40, 11 }
 0x148   : > { %801 = vst.msk [vmem:[#allocation2 + $0x1c] sm:$0xf] %vm800_vm6, %v2807_v42  ;;  %v2808_v53 = vpack.c.bf16 %v598_v43, %v598_v43  ;;  %v728_v54 = vsel %vm3929_vm7, %v670_v45, 0.0  ;;  %v2852_v55 = vadd.f32 %v2851_v49, %v2850_v46  ;;  %v2853_v56 = vpop.f32.mrb[6].mxu0  ;;  %v3986_v46 = vrot.slane %v1238_v27, 11  ;;  %v3263_v49 = vld [vmem:[%s4923_s3 + $0xc0] sm:$0xff]  }
 0x149   : > { %825 = vst.msk [vmem:[#allocation2 + $0x8] sm:$0xf] %vm800_vm6, %v2823_v48  ;;  %v2824_v58 = vpack.c.bf16 %v728_v54, %v728_v54  ;;  %v2854_v59 = vpop.f32.mrb[7].mxu0  ;;  %v3990_v48 = vrot.slane %v1177_v30, 5  ;;  %v731_v54 = vstv %s3976_s19  ;;  %3000 = vmatprep.subr.bf16.mxu0 %v3263_v49  ;;  %3100 = vmatprep.subr.bf16.mxu1 %v3263_v49  ;;  %v4019_v7 = vrot.slane %v1269_v38, 5 }
 0x14a   : > { %802 = vst.msk [vmem:[#allocation2 + $0x20] sm:$0xf] %vm800_vm6, %v2808_v53  ;;  %v543_v63 = vadd.f32 %v2852_v55, %v3927_v6  ;;  %v2855_v0 = vadd.f32 %v2854_v59, %v2853_v56  ;;  %v3999_v55 = vrot.slane %v1135_v35, 5  ;;  %v4004_v56 = vld [vmem:[%s4923_s3 + $0x80] sm:$0xff]   ;;  %vm4133_vm12 = vcmp.eq.s32.totalorder %v731_v54, 1 }
 0x14b   : > { %826 = vst.msk [vmem:[#allocation2 + $0xc] sm:$0xf] %vm800_vm6, %v2824_v58  ;;  %3108 = vmatpush3.bf16.msra.mxu1 %v4004_v56 }
 0x14c   : > { %v599_v8 = vmax.f32 %v543_v63, 0.0  ;;  %v546_v9 = vadd.f32 %v2855_v0, %v3927_v6 }
 0x14e   : > { %v2809_v19 = vpack.c.bf16 %v599_v8, %v599_v8  ;;  %v600_v20 = vmax.f32 %v546_v9, 0.0  ;;  %v2856_v21 = vpop.f32.mrb[8].mxu0  ;;  %v4021_v8 = vrot.slane %v1205_v39, 5 }
 0x14f   : > { %v2857_v25 = vpop.f32.mrb[9].mxu0  ;;  %v3970_v26 = vld [vmem:[#allocation2 + $0x1c] sm:$0xf] }
 0x150   : > { %803 = vst.msk [vmem:[#allocation2 + $0x30] sm:$0xf] %vm800_vm6, %v2809_v19  ;;  %v2810_v31 = vpack.c.bf16 %v600_v20, %v600_v20  ;;  %v2858_v32 = vadd.f32 %v2857_v25, %v2856_v21  ;;  %v2859_v33 = vpop.f32.mrb[10].mxu0  ;;  %v4937_v34 = vshrl.u32 %v3970_v26, 16  ;;  %v977_v45 = vshll.u32 %v3970_v26, 16 }
 0x151   : > { %v2860_v36 = vpop.f32.mrb[11].mxu0  ;;  %v3978_v37 = vld [vmem:[#allocation2 + $0x20] sm:$0xf]  ;;  %v3996_v53 = vld [vmem:[#allocation2 + $0x8] sm:$0xf] }
 0x152   : > { %804 = vst.msk [vmem:[#allocation2 + $0x34] sm:$0xf] %vm800_vm6, %v2810_v31  ;;  %v551_v41 = vadd.f32 %v2858_v32, %v3927_v6  ;;  %v2861_v42 = vadd.f32 %v2860_v36, %v2859_v33  ;;  %v976_v43 = vrot.slane %v4937_v34, 7  ;;  %v4935_v44 = vshrl.u32 %v3978_v37, 16  ;;  %v4009_v60 = vld [vmem:[#allocation2 + $0xc] sm:$0xf] }
 0x153   : > { %v4936_v59 = vshll.u32 %v3978_v37, 16  ;;  %v952_v18 = vshrl.u32 %v3996_v53, 16  ;;  %v955_v19 = vshll.u32 %v3996_v53, 16  ;;  %v4031_v25 = vrot.slane %v977_v45, 5  ;;  %v4046_v36 = vld [vmem:[%s4923_s3 + $0xc8] sm:$0xff]  }
 0x154   : > { %v601_v51 = vmax.f32 %v551_v41, 0.0  ;;  %v554_v52 = vadd.f32 %v2861_v42, %v3927_v6  ;;  %v979_v57 = vor.u32 %v977_v45, %v976_v43  ;;  %v985_v58 = vrot.slane %v4935_v44, 7  ;;  %3101 = vmatprep.subr.bf16.mxu1 %v4046_v36 }
 0x155   : > { %v981_v10 = vrot.slane %v976_v43, 4  ;;  %v4934_v27 = vshrl.u32 %v4009_v60, 16  ;;  %v4053_v41 = vrot.slane %v952_v18, 7 }
 0x156   : > { %v2811_v62 = vpack.c.bf16 %v601_v51, %v601_v51  ;;  %v602_v63 = vmax.f32 %v554_v52, 0.0  ;;  %v2862_v0 = vpop.f32.mrb[12].mxu0  ;;  %v988_v11 = vor.u32 %v4936_v59, %v985_v58  ;;  %v980_v30 = vsel %vm4015_vm9, %v3933_v24, %v979_v57  ;;  %v4066_v58 = vld [vmem:[%s4923_s3 + $0x88] sm:$0xff]  }
 0x157   : > { %v2863_v9 = vpop.f32.mrb[13].mxu0  ;;  %v4028_v20 = vld [vmem:[#allocation2 + $0x30] sm:$0xf]  ;;  %v963_v42 = vrot.slane %v4934_v27, 7  ;;  %v964_v52 = vshll.u32 %v4009_v60, 16  ;;  %3109 = vmatpush3.bf16.msra.mxu1 %v4066_v58 }
 0x158   : > { %805 = vst.msk [vmem:[#allocation2 + $0x44] sm:$0xf] %vm800_vm6, %v2811_v62  ;;  %v2812_v21 = vpack.c.bf16 %v602_v63, %v602_v63  ;;  %v2864_v22 = vadd.f32 %v2863_v9, %v2862_v0  ;;  %v2865_v23 = vpop.f32.mrb[14].mxu0  ;;  %v989_v31 = vsel %vm4015_vm9, %v981_v10, %v988_v11  ;;  %v996_v33 = vshrl.u32 %v4028_v20, 16 }
 0x159   : > { %v2866_v28 = vpop.f32.mrb[15].mxu0  ;;  %v4039_v32 = vld [vmem:[#allocation2 + $0x34] sm:$0xf]  ;;  %v999_v35 = vshll.u32 %v4028_v20, 16  ;;  %v4050_v24 = vcombine.low %v980_v30, %v989_v31  ;;  %v2712_v62 = vcombine.low %v3996_v53, %v4009_v60  ;;  %v4078_v31 = vor.u32 %v955_v19, %v4053_v41 }
 0x15a   : > { %806 = vst.msk [vmem:[#allocation2 + $0x48] sm:$0xf] %vm800_vm6, %v2812_v21  ;;  %v559_v38 = vadd.f32 %v2864_v22, %v3927_v6  ;;  %v2867_v39 = vadd.f32 %v2866_v28, %v2865_v23  ;;  %v1005_v40 = vshrl.u32 %v4039_v32, 16  ;;  %v998_v43 = vrot.slane %v996_v33, 7 }
 0x15b   : > { %4979 = vst [vmem:[#allocation13_spill] sm:$0xff] %v4050_v24  ;;  %v1008_v45 = vshll.u32 %v4039_v32, 16  ;;  %1416 = vrot.lane.b32.xlu0 %v4050_v24, %s3452_s13  ;;  %v4070_v0 = vrot.slane %v999_v35, 5  ;;  %v4072_v9 = vrot.slane %v996_v33, 4 }
 0x15c   : > { %v603_v49 = vmax.f32 %v559_v38, 0.0  ;;  %v562_v51 = vadd.f32 %v2867_v39, %v3927_v6  ;;  %v1007_v57 = vrot.slane %v1005_v40, 7  ;;  %v1001_v63 = vor.u32 %v999_v35, %v998_v43 }
 0x15d   : > { %v1003_v22 = vrot.slane %v998_v43, 4  ;;  %v4085_v38 = vrot.slane %v1008_v45, 5  ;;  %v4087_v39 = vrot.slane %v1005_v40, 4 }
 0x15e   : > { %v2813_v10 = vpack.c.bf16 %v603_v49, %v603_v49  ;;  %v604_v11 = vmax.f32 %v562_v51, 0.0  ;;  %v2868_v21 = vpop.f32.mrb[16].mxu0  ;;  %v1010_v23 = vor.u32 %v1008_v45, %v1007_v57  ;;  %v2930_v28 = vpop.f32.mrb[4].mxu1  ;;  %v1002_v35 = vsel %vm4015_vm9, %v3937_v29, %v1001_v63 }
 0x15f   : > { %v2869_v30 = vpop.f32.mrb[17].mxu0  ;;  %v4083_v33 = vld [vmem:[#allocation2 + $0x44] sm:$0xf]  ;;  %v2931_v43 = vpop.f32.mrb[5].mxu1  ;;  %1373 = vrot.lane.b32.xlu0 %v2712_v62, %s3452_s13  ;;  %v4094_v63 = vor.u32 %v964_v52, %v963_v42  ;;  %v4096_v45 = vrot.slane %v952_v18, 4 }
 0x160   : > { %807 = vst.msk [vmem:[#allocation2 + $0x58] sm:$0xf] %vm800_vm6, %v2813_v10  ;;  %v2814_v49 = vpack.c.bf16 %v604_v11, %v604_v11  ;;  %v2870_v51 = vadd.f32 %v2869_v30, %v2868_v21  ;;  %v2871_v57 = vpop.f32.mrb[18].mxu0  ;;  %v1011_v27 = vsel %vm4015_vm9, %v1003_v22, %v1010_v23  ;;  %v4939_v44 = vshrl.u32 %v4083_v33, 16  ;;  %v2933_v29 = vpop.f32.mrb[6].mxu1 }
 0x161   : > { %v2872_v40 = vpop.f32.mrb[19].mxu0  ;;  %v4098_v59 = vcombine.low %v1002_v35, %v1011_v27  ;;  %v4100_v34 = vld [vmem:[#allocation2 + $0x48] sm:$0xf]  ;;  %v4938_v10 = vshll.u32 %v4083_v33, 16  ;;  %v2934_v18 = vpop.f32.mrb[7].mxu1  ;;  %v4111_v27 = vld [vmem:[%s4923_s3 + $0xd0] sm:$0xff]   ;;  %v4121_v23 = vcombine.low %v3970_v26, %v3978_v37  ;;  %v1155_v30 = vor.u32 %v4070_v0, %v4072_v9 }
 0x162   : > { %808 = vst.msk [vmem:[#allocation2 + $0x5c] sm:$0xf] %vm800_vm6, %v2814_v49  ;;  %v567_v62 = vadd.f32 %v2870_v51, %v3927_v6  ;;  %v2873_v11 = vadd.f32 %v2872_v40, %v2871_v57  ;;  %v1020_v21 = vrot.slane %v4939_v44, 7  ;;  %v4941_v42 = vshrl.u32 %v4100_v34, 16  ;;  %4981 = vst [vmem:[#allocation15_spill] sm:$0xff] %v4111_v27  ;;  %v4140_v0 = vld [vmem:[%s4923_s3 + $0x90] sm:$0xff]   ;;  %3102 = vmatprep.subr.bf16.mxu1 %v4111_v27 }
 0x163   : > { %4980 = vst [vmem:[#allocation14_spill] sm:$0xff] %v4098_v59  ;;  %v4115_v22 = vrot.slane %v955_v19, 5  ;;  %1418 = vrot.lane.b32.xlu1 %v4098_v59, %s3452_s13  ;;  %4982 = vst [vmem:[#allocation16_spill] sm:$0xff] %v4121_v23  ;;  %v1160_v35 = vor.u32 %v4087_v39, %v4085_v38  ;;  %v2932_v40 = vadd.f32 %v2931_v43, %v2930_v28  ;;  %3110 = vmatpush3.bf16.msra.mxu1 %v4140_v0 }
 0x164   : > { %v605_v49 = vmax.f32 %v567_v62, 0.0  ;;  %v570_v51 = vadd.f32 %v2873_v11, %v3927_v6  ;;  %v1023_v53 = vor.u32 %v4938_v10, %v1020_v21  ;;  %4985 = vst [vmem:[#allocation17_spill] sm:$0xff] %v4140_v0  ;;  %v1025_v9 = vrot.slane %v1020_v21, 4 }
 0x165   : > { %v1029_v39 = vrot.slane %v4941_v42, 7  ;;  %v2935_v62 = vadd.f32 %v2934_v18, %v2933_v29  ;;  %v4145_v10 = vrot.slane %v964_v52, 5  ;;  %v4149_v19 = vcombine.low %v4028_v20, %v4039_v32 }
 0x166   : > { %v2815_v11 = vpack.c.bf16 %v605_v49, %v605_v49  ;;  %v606_v54 = vmax.f32 %v570_v51, 0.0  ;;  %v2874_v44 = vpop.f32.mrb[20].mxu0  ;;  %v4987_v21 = vshll.u32 %v4100_v34, 16  ;;  %v715_v43 = vadd.f32 %v2932_v40, %v3927_v6 }
 0x167   : > { %4986 = vst [vmem:[#allocation18_spill] sm:$0xff] %v4149_v19  ;;  %v2875_v59 = vpop.f32.mrb[21].mxu0  ;;  %1375 = vrot.lane.b32.xlu1 %v4121_v23, %s3452_s13  ;;  %v921_v28 = vld [vmem:[#allocation2 + $0x58] sm:$0xf]  ;;  %v4988_v52 = vshrl.u32 %v3970_v26, 16  ;;  %v4989_v18 = vshll.u32 %v3978_v37, 16 }
 0x168   : > { %v1032_v42 = vor.u32 %v4987_v21, %v1029_v39  ;;  %809 = vst.msk [vmem:[#allocation2 + $0x6c] sm:$0xf] %vm800_vm6, %v2815_v11  ;;  %v2816_v32 = vpack.c.bf16 %v606_v54, %v606_v54  ;;  %v2876_v49 = vadd.f32 %v2875_v59, %v2874_v44  ;;  %v2877_v51 = vpop.f32.mrb[22].mxu0  ;;  %v1040_v23 = vshrl.u32 %v921_v28, 16 }
 0x169   : > { %v4159_v29 = vrot.slane %v4988_v52, 4  ;;  %v4163_v20 = vrot.slane %v4989_v18, 5  ;;  %v1043_v0 = vshll.u32 %v921_v28, 16  ;;  %v2878_v27 = vpop.f32.mrb[23].mxu0  ;;  %v1024_v39 = vsel %vm4015_vm9, %v3951_v1, %v1023_v53  ;;  %v922_v40 = vld [vmem:[#allocation2 + $0x5c] sm:$0xf] }
 0x16a   : > { %v1033_v26 = vsel %vm4015_vm9, %v1025_v9, %v1032_v42  ;;  %v4171_v21 = vrot.slane %v1155_v30, 4  ;;  %v4173_v52 = vrot.slane %v1160_v35, 4  ;;  %810 = vst.msk [vmem:[#allocation2 + $0x70] sm:$0xf] %vm800_vm6, %v2816_v32  ;;  %v575_v44 = vadd.f32 %v2876_v49, %v3927_v6  ;;  %v4182_v1 = vld [vmem:[%s4923_s3 + $0xd8] sm:$0xff]  }
 0x16b   : > { %v2879_v59 = vadd.f32 %v2878_v27, %v2877_v51  ;;  %v4177_v11 = vcombine.low %v1024_v39, %v1033_v26  ;;  %v1042_v54 = vrot.slane %v1040_v23, 7  ;;  %4991 = vst [vmem:[#allocation20_spill] sm:$0xff] %v4182_v1  ;;  %1377 = vrot.lane.b32.xlu1 %v4149_v19, %s3452_s13  ;;  %v4188_v42 = vcombine.low %v4083_v33, %v4100_v34  ;;  %v4197_v49 = vld [vmem:[%s4923_s3 + $0x98] sm:$0xff]  }
 0x16c   : > { %v1049_v30 = vshrl.u32 %v922_v40, 16  ;;  %v721_v35 = vmax.f32 %v715_v43, 0.0  ;;  %v718_v53 = vadd.f32 %v2935_v62, %v3927_v6  ;;  %v607_v27 = vmax.f32 %v575_v44, 0.0  ;;  %4993 = vst [vmem:[#allocation22_spill] sm:$0xff] %v4197_v49  ;;  %3103 = vmatprep.subr.bf16.mxu1 %v4182_v1 }
 0x16d   : > { %4990 = vst [vmem:[#allocation19_spill] sm:$0xff] %v4177_v11  ;;  %4992 = vst [vmem:[#allocation21_spill] sm:$0xff] %v4188_v42  ;;  %v578_v9 = vadd.f32 %v2879_v59, %v3927_v6  ;;  %1420 = vrot.lane.b32.xlu0 %v4177_v11, %s3452_s13  ;;  %v1181_v18 = vrot.slane %v1040_v23, 4  ;;  %v1182_v32 = vrot.slane %v1043_v0, 5  ;;  %v1052_v39 = vshll.u32 %v922_v40, 16  ;;  %3111 = vmatpush3.bf16.msra.mxu1 %v4197_v49 }
 0x16e   : > { %v1051_v51 = vrot.slane %v1049_v30, 7  ;;  %v1045_v43 = vor.u32 %v1043_v0, %v1042_v54  ;;  %v1047_v26 = vrot.slane %v1042_v54, 4  ;;  %v2817_v44 = vpack.c.bf16 %v607_v27, %v607_v27  ;;  %v2880_v59 = vpop.f32.mrb[24].mxu0 }
 0x16f   : > { %v608_v23 = vmax.f32 %v578_v9, 0.0  ;;  %v1166_v19 = vsel %vm4202_vm13, %v4173_v52, %v3943_v50  ;;  %v1141_v11 = vor.u32 %v4031_v25, %v4159_v29  ;;  %v2881_v0 = vpop.f32.mrb[25].mxu0  ;;  %1379 = vrot.lane.b32.xlu1 %v4188_v42, %s3452_s13  ;;  %v4215_v54 = vcombine.low %v921_v28, %v922_v40  ;;  %v4217_v27 = vld [vmem:[#allocation2 + $0x6c] sm:$0xf]  ;;  %v4226_v28 = vld [vmem:[%s4923_s3 + $0xe0] sm:$0xff]  }
 0x170   : > { %v1054_v1 = vor.u32 %v1052_v39, %v1051_v51  ;;  %v733_v9 = vsel %vm4133_vm12, %v721_v35, 0.0  ;;  %v722_v24 = vmax.f32 %v718_v53, 0.0  ;;  %811 = vst.msk [vmem:[#allocation2 + $0x80] sm:$0xf] %vm800_vm6, %v2817_v44  ;;  %v2882_v52 = vadd.f32 %v2881_v0, %v2880_v59  ;;  %v2883_v25 = vpop.f32.mrb[26].mxu0  ;;  %3104 = vmatprep.subr.bf16.mxu1 %v4226_v28 }
 0x171   : > { %4996 = vst [vmem:[#allocation23_spill] sm:$0xff] %v4215_v54  ;;  %v2818_v50 = vpack.c.bf16 %v608_v23, %v608_v23  ;;  %v1062_v29 = vshrl.u32 %v4217_v27, 16  ;;  %v1183_v49 = vor.u32 %v1182_v32, %v1181_v18  ;;  %v2884_v40 = vpop.f32.mrb[27].mxu0  ;;  %v4228_v51 = vrot.slane %v1049_v30, 4  ;;  %v4235_v44 = vld [vmem:[#allocation2 + $0x70] sm:$0xf] }
 0x172   : > { %v1046_v35 = vsel %vm4015_vm9, %v3953_v2, %v1045_v43  ;;  %v1055_v53 = vsel %vm4015_vm9, %v1047_v26, %v1054_v1  ;;  %v2825_v23 = vpack.c.bf16 %v733_v9, %v733_v9  ;;  %v583_v18 = vadd.f32 %v2882_v52, %v3927_v6 }
 0x173   : > { %812 = vst.msk [vmem:[#allocation2 + $0x84] sm:$0xf] %vm800_vm6, %v2818_v50  ;;  %v2885_v32 = vadd.f32 %v2884_v40, %v2883_v25  ;;  %v4239_v59 = vcombine.low %v1046_v35, %v1055_v53  ;;  %v1064_v0 = vrot.slane %v1062_v29, 7  ;;  %1381 = vrot.lane.b32.xlu1 %v4215_v54, %s3452_s13  ;;  %v1065_v2 = vshll.u32 %v4217_v27, 16 }
 0x174   : > { %v1071_v1 = vshrl.u32 %v4235_v44, 16  ;;  %v4246_v30 = vrot.slane %v1052_v39, 5  ;;  %836 = vst.msk [vmem:[#allocation2 + $0xbc] sm:$0xf] %vm800_vm6, %v2825_v23  ;;  %v734_v43 = vsel %vm4133_vm12, %v722_v24, 0.0  ;;  %v609_v26 = vmax.f32 %v583_v18, 0.0 }
 0x175   : > { %4997 = vst [vmem:[#allocation24_spill] sm:$0xff] %v4239_v59  ;;  %v586_v9 = vadd.f32 %v2885_v32, %v3927_v6  ;;  %1422 = vrot.lane.b32.xlu0 %v4239_v59, %s3452_s13  ;;  %v4955_v50 = vshll.u32 %v4235_v44, 16  ;;  %v4255_v52 = vrot.slane %v1183_v49, 4  ;;  %v4260_v39 = vld [vmem:[%s4923_s3 + $0xa0] sm:$0xff]   ;;  %v4264_v57 = vcombine.low %v4217_v27, %v4235_v44 }
 0x176   : > { %4998 = vst [vmem:[#allocation25_spill] sm:$0xff] %v4260_v39  ;;  %v1073_v25 = vrot.slane %v1071_v1, 7  ;;  %v1067_v24 = vor.u32 %v1065_v2, %v1064_v0  ;;  %v1069_v40 = vrot.slane %v1064_v0, 4  ;;  %v2819_v35 = vpack.c.bf16 %v609_v26, %v609_v26  ;;  %v2886_v23 = vpop.f32.mrb[28].mxu0  ;;  %3112 = vmatpush3.bf16.msra.mxu1 %v4260_v39 }
 0x177   : > { %4999 = vst [vmem:[#allocation26_spill] sm:$0xff] %v4264_v57  ;;  %v610_v53 = vmax.f32 %v586_v9, 0.0  ;;  %v1158_v49 = vsel %vm4202_vm13, %v4171_v21, %v4085_v38  ;;  %v2826_v18 = vpack.c.bf16 %v734_v43, %v734_v43  ;;  %v2887_v32 = vpop.f32.mrb[29].mxu0  ;;  %1383 = vrot.lane.b32.xlu1 %v4264_v57, %s3452_s13  ;;  %v929_v54 = vld [vmem:[#allocation2 + $0x80] sm:$0xf]  ;;  %v4277_v26 = vrot.slane %v1141_v11, 4 }
 0x178   : > { %v1076_v27 = vor.u32 %v4955_v50, %v1073_v25  ;;  %v4275_v0 = vcombine.low %v1158_v49, %v1166_v19  ;;  %v5000_v9 = vshrl.u32 %v3978_v37, 16  ;;  %813 = vst.msk [vmem:[#allocation2 + $0x94] sm:$0xf] %vm800_vm6, %v2819_v35  ;;  %v2888_v21 = vadd.f32 %v2887_v32, %v2886_v23  ;;  %v2889_v43 = vpop.f32.mrb[30].mxu0 }
 0x179   : > { %v2820_v38 = vpack.c.bf16 %v610_v53, %v610_v53  ;;  %v1084_v59 = vshrl.u32 %v929_v54, 16  ;;  %v1087_v39 = vshll.u32 %v929_v54, 16  ;;  %837 = vst.msk [vmem:[#allocation2 + $0xc0] sm:$0xf] %vm800_vm6, %v2826_v18  ;;  %v2890_v57 = vpop.f32.mrb[31].mxu0  ;;  %v1068_v19 = vsel %vm4015_vm9, %v3962_v13, %v1067_v24 }
 0x17a   : > { %v4281_v42 = vrot.slane %v5000_v9, 4  ;;  %v1077_v11 = vsel %vm4015_vm9, %v1069_v40, %v1076_v27  ;;  %v930_v37 = vld [vmem:[#allocation2 + $0x84] sm:$0xf]  ;;  %v1188_v35 = vor.u32 %v4228_v51, %v4246_v30  ;;  %v591_v53 = vadd.f32 %v2888_v21, %v3927_v6  ;;  %v4305_v27 = vld [vmem:[%s4923_s3 + $0xe8] sm:$0xff]  }
 0x17b   : > { %814 = vst.msk [vmem:[#allocation2 + $0x98] sm:$0xf] %vm800_vm6, %v2820_v38  ;;  %v2891_v23 = vadd.f32 %v2890_v57, %v2889_v43  ;;  %v4298_v49 = vcombine.low %v1068_v19, %v1077_v11  ;;  %v1086_v13 = vrot.slane %v1084_v59, 7  ;;  %v4300_v24 = vrot.slane %v1062_v29, 4  ;;  %v4315_v29 = vld [vmem:[%s4923_s3 + $0xa8] sm:$0xff]   ;;  %3105 = vmatprep.subr.bf16.mxu1 %v4305_v27 }
 0x17c   : > { %v1093_v40 = vshrl.u32 %v930_v37, 16  ;;  %v1096_v18 = vshll.u32 %v930_v37, 16  ;;  %v1209_v32 = vrot.slane %v1084_v59, 4  ;;  %v611_v9 = vmax.f32 %v591_v53, 0.0  ;;  %3113 = vmatpush3.bf16.msra.mxu1 %v4315_v29 }
 0x17d   : > { %v594_v51 = vadd.f32 %v2891_v23, %v3927_v6  ;;  %1424 = vrot.lane.b32.xlu0 %v4298_v49, %s3452_s13  ;;  %v1210_v57 = vrot.slane %v1087_v39, 5  ;;  %v4310_v38 = vcombine.low %v929_v54, %v930_v37  ;;  %v4317_v59 = vrot.slane %v1065_v2, 5 }
 0x17e   : > { %v1095_v21 = vrot.slane %v1093_v40, 7  ;;  %v1089_v43 = vor.u32 %v1087_v39, %v1086_v13  ;;  %v1091_v19 = vrot.slane %v1086_v13, 4  ;;  %v2821_v11 = vpack.c.bf16 %v611_v9, %v611_v9 }
 0x17f   : > { %5001 = vst [vmem:[#allocation27_spill] sm:$0xff] %v4310_v38  ;;  %v4320_v6 = vrot.slane %v1071_v1, 4  ;;  %v612_v53 = vmax.f32 %v594_v51, 0.0  ;;  %1385 = vrot.lane.b32.xlu1 %v4310_v38, %s3452_s13  ;;  %v1189_v54 = vrot.slane %v1188_v35, 4  ;;  %v1215_v37 = vrot.slane %v1093_v40, 4 }
 0x180   : > { %v1098_v23 = vor.u32 %v1096_v18, %v1095_v21  ;;  %v933_v50 = vld [vmem:[#allocation2 + $0x94] sm:$0xf]  ;;  %v4325_v2 = vrot.slane %v1096_v18, 5  ;;  %v1146_v39 = vor.u32 %v4281_v42, %v4163_v20  ;;  %815 = vst.msk [vmem:[#allocation2 + $0xa8] sm:$0xf] %vm800_vm6, %v2821_v11  ;;  %v1211_v9 = vor.u32 %v1210_v57, %v1209_v32 }
 0x181   : > { %v2822_v13 = vpack.c.bf16 %v612_v53, %v612_v53  ;;  %v1106_v1 = vshrl.u32 %v933_v50, 16  ;;  %v5002_v51 = vshrl.u32 %v4083_v33, 16  ;;  %v1090_v35 = vsel %vm4015_vm9, %v3964_v14, %v1089_v43 }
 0x182   : > { %v1099_v40 = vsel %vm4015_vm9, %v1091_v19, %v1098_v23  ;;  %v934_v18 = vld [vmem:[#allocation2 + $0x98] sm:$0xf]  ;;  %v1109_v21 = vshll.u32 %v933_v50, 16  ;;  %v5003_v38 = vshll.u32 %v4083_v33, 16  ;;  %v1194_v14 = vsel %vm4202_vm13, %v1189_v54, %v3956_v3  ;;  %v4353_v33 = vld [vmem:[%s4923_s3 + $0xf0] sm:$0xff]  }
 0x183   : > { %v1167_v25 = vrot.slane %v5002_v51, 4  ;;  %816 = vst.msk [vmem:[#allocation2 + $0xac] sm:$0xf] %vm800_vm6, %v2822_v13  ;;  %v4340_v11 = vcombine.low %v1090_v35, %v1099_v40  ;;  %v1108_v32 = vrot.slane %v1106_v1, 7  ;;  %v1115_v57 = vshrl.u32 %v934_v18, 16  ;;  %v4360_v3 = vld [vmem:[%s4923_s3 + $0xb0] sm:$0xff]   ;;  %3106 = vmatprep.subr.bf16.mxu1 %v4353_v33 }
 0x184   : > { %v1168_v42 = vrot.slane %v5003_v38, 5  ;;  %v1118_v53 = vshll.u32 %v934_v18, 16  ;;  %v4342_v51 = vcombine.low %v933_v50, %v934_v18  ;;  %v1216_v43 = vor.u32 %v1215_v37, %v4325_v2  ;;  %3114 = vmatpush3.bf16.msra.mxu1 %v4360_v3 }
 0x185   : > { %5004 = vst [vmem:[#allocation28_spill] sm:$0xff] %v4340_v11  ;;  %v4348_v19 = vrot.slane %v1146_v39, 4  ;;  %1426 = vrot.lane.b32.xlu0 %v4340_v11, %s3452_s13  ;;  %v1117_v38 = vrot.slane %v1115_v57, 7  ;;  %v1229_v23 = vrot.slane %v1115_v57, 4  ;;  %v1111_v50 = vor.u32 %v1109_v21, %v1108_v32  ;;  %v4439_v11 = vld [vmem:[#allocation2 + $0xbc] sm:$0xf] }
 0x186   : > { %5005 = vst [vmem:[#allocation29_spill] sm:$0xff] %v4342_v51  ;;  %v1113_v13 = vrot.slane %v1108_v32, 4  ;;  %v1223_v54 = vrot.slane %v1106_v1, 4  ;;  %v1224_v37 = vrot.slane %v1109_v21, 5  ;;  %1387 = vrot.lane.b32.xlu1 %v4342_v51, %s3452_s13  ;;  %v1212_v39 = vrot.slane %v1211_v9, 4 }
 0x187   : > { %v4364_v35 = vrot.slane %v1118_v53, 5  ;;  %v1120_v40 = vor.u32 %v1118_v53, %v1117_v38  ;;  %v5006_v18 = vsel %vm4202_vm13, %v4255_v52, %v4246_v30  ;;  %v1144_v1 = vsel %vm4202_vm13, %v4277_v26, %v4163_v20  ;;  %v4379_v57 = vld [vmem:[#allocation2 + $0xa8] sm:$0xf] }
 0x188   : > { %v4372_v32 = vcombine.low %v5006_v18, %v1194_v14  ;;  %v1169_v21 = vor.u32 %v1168_v42, %v1167_v25  ;;  %v1217_v9 = vrot.slane %v1216_v43, 4  ;;  %v5007_v38 = vshll.u32 %v4100_v34, 16 }
 0x189   : > { %v1230_v53 = vor.u32 %v1229_v23, %v4364_v35  ;;  %v5008_v30 = vshrl.u32 %v4100_v34, 16  ;;  %v1112_v14 = vsel %vm4015_vm9, %v3966_v15, %v1111_v50  ;;  %v1121_v20 = vsel %vm4015_vm9, %v1113_v13, %v1120_v40 }
 0x18a   : > { %v4384_v51 = vrot.slane %v5007_v38, 5  ;;  %v1243_v26 = vshrl.u32 %v4379_v57, 16  ;;  %v1246_v25 = vshll.u32 %v4379_v57, 16  ;;  %1442 = vrot.lane.b32.xlu1 %v4275_v0, %s3452_s13  ;;  %v4397_v42 = vcombine.low %v1112_v14, %v1121_v20  ;;  %v4402_v43 = vld [vmem:[#allocation2 + $0xac] sm:$0xf]  ;;  %v4426_v20 = vld [vmem:[%s4923_s3 + $0xb8] sm:$0xff]  }
 0x18b   : > { %v1173_v52 = vrot.slane %v5008_v30, 4  ;;  %v1214_v34 = vsel %vm4202_vm13, %v1212_v39, %v4325_v2  ;;  %v1225_v23 = vor.u32 %v1224_v37, %v1223_v54  ;;  %v1152_v15 = vsel %vm4202_vm13, %v4348_v19, %v3958_v4  ;;  %v4419_v4 = vld [vmem:[%s4923_s3 + $0xf8] sm:$0xff]  }
 0x18c   : > { %5009 = vst [vmem:[#allocation30_spill] sm:$0xff] %v4397_v42  ;;  %v1245_v50 = vrot.slane %v1243_v26, 7  ;;  %v1252_v13 = vshrl.u32 %v4402_v43, 16  ;;  %v1255_v40 = vshll.u32 %v4402_v43, 16  ;;  %v1259_v18 = vrot.slane %v1243_v26, 4  ;;  %1428 = vrot.lane.b32.xlu0 %v4397_v42, %s3452_s13  ;;  %3107 = vmatprep.subr.bf16.mxu1 %v4419_v4 }
 0x18d   : > { %v1222_v2 = vsel %vm4202_vm13, %v1217_v9, %v3968_v16  ;;  %v1231_v39 = vrot.slane %v1230_v53, 4  ;;  %v1260_v54 = vrot.slane %v1246_v25, 5  ;;  %v1174_v37 = vor.u32 %v1173_v52, %v4384_v51  ;;  %3115 = vmatpush3.bf16.msra.mxu1 %v4426_v20 }
 0x18e   : > { %v1248_v19 = vor.u32 %v1246_v25, %v1245_v50  ;;  %v1250_v38 = vrot.slane %v1245_v50, 4  ;;  %v1254_v30 = vrot.slane %v1252_v13, 7  ;;  %v4421_v14 = vrot.slane %v1169_v21, 4  ;;  %1446 = vrot.lane.b32.xlu1 %v4372_v32, %s3452_s13 }
 0x18f   : > { %v1226_v16 = vrot.slane %v1225_v23, 4  ;;  %v1261_v9 = vor.u32 %v1260_v54, %v1259_v18  ;;  %v1263_v53 = vrot.slane %v1255_v40, 5  ;;  %v1265_v52 = vrot.slane %v1252_v13, 4 }
 0x190   : > { %v4431_v26 = vcombine.low %v1214_v34, %v1222_v2  ;;  %v1257_v25 = vor.u32 %v1255_v40, %v1254_v30  ;;  %v1197_v21 = vor.u32 %v4317_v59, %v4300_v24  ;;  %v5010_v50 = vshll.u32 %v4235_v44, 16 }
 0x191   : > { %v1236_v23 = vsel %vm4202_vm13, %v1231_v39, %v3988_v47  ;;  %v1266_v13 = vor.u32 %v1265_v52, %v1263_v53  ;;  %v1175_v18 = vrot.slane %v1174_v37, 4  ;;  %v1279_v34 = vshrl.u32 %v4439_v11, 16  ;;  %v868_v52 = vld [vmem:[#allocation2 + $0xb8] sm:$0x8] }
 0x192   : > { %v4437_v42 = vrot.slane %v5010_v50, 5  ;;  %v1249_v24 = vsel %vm4015_vm9, %v3986_v46, %v1248_v19  ;;  %v1258_v44 = vsel %vm4015_vm9, %v1250_v38, %v1257_v25  ;;  %v1262_v59 = vrot.slane %v1261_v9, 4  ;;  %1450 = vrot.lane.b32.xlu1 %v4431_v26, %s3452_s13  ;;  %v4471_v9 = vld [vmem:[#allocation2 + $0xc0] sm:$0xf]  ;;  %v901_v25 = vld [vmem:[#allocation2 + $0xc4] sm:$0x1] }
 0x193   : > { %v1282_v40 = vshll.u32 %v4439_v11, 16  ;;  %v4454_v2 = vcombine.low %v1249_v24, %v1258_v44  ;;  %v1228_v47 = vsel %vm4202_vm13, %v1226_v16, %v4364_v35  ;;  %v1267_v39 = vrot.slane %v1266_v13, 4 }
 0x194   : > { %v1202_v54 = vor.u32 %v4320_v6, %v4437_v42  ;;  %v5011_v46 = vshrl.u32 %v4009_v60, 16  ;;  %v4463_v19 = vcombine.low %v1228_v47, %v1236_v23  ;;  %v4465_v38 = vcombine.low %v1144_v1, %v1152_v15 }
 0x195   : > { %v1172_v30 = vsel %vm4202_vm13, %v4421_v14, %v4384_v51  ;;  %1430 = vrot.lane.b32.xlu0 %v4454_v2, %s3452_s13  ;;  %v1272_v6 = vsel %vm4202_vm13, %v1267_v39, %v4019_v7  ;;  %v1288_v60 = vshrl.u32 %v4471_v9, 16  ;;  %v1295_v35 = vrot.slane %v1279_v34, 4 }
 0x196   : > { %v1131_v37 = vrot.slane %v5011_v46, 4  ;;  %v1296_v16 = vrot.slane %v1282_v40, 5  ;;  %v1264_v1 = vsel %vm4202_vm13, %v1262_v59, %v1263_v53  ;;  %v1180_v51 = vsel %vm4202_vm13, %v1175_v18, %v3990_v48  ;;  %1452 = vrot.lane.b32.xlu1 %v4463_v19, %s3452_s13 }
 0x197   : > { %v1198_v15 = vrot.slane %v1197_v21, 4  ;;  %v1291_v14 = vshll.u32 %v4471_v9, 16  ;;  %v1203_v7 = vrot.slane %v1202_v54, 4  ;;  %v1281_v50 = vrot.slane %v1279_v34, 7 }
 0x198   : > { %v1290_v23 = vrot.slane %v1288_v60, 7  ;;  %v1127_v13 = vor.u32 %v4115_v22, %v4096_v45  ;;  %v4489_v24 = vcombine.low %v1264_v1, %v1272_v6  ;;  %v1132_v53 = vor.u32 %v1131_v37, %v4145_v10 }
 0x199   : > { %v958_v48 = vsel %vm4015_vm9, %v4011_v61, %v4078_v31  ;;  %v959_v21 = vrot.slane %v4053_v41, 4  ;;  %1440 = vrot.lane.b32.xlu0 %v4465_v38, %s3452_s13  ;;  %v1297_v18 = vor.u32 %v1296_v16, %v1295_v35  ;;  %v869_v44 = vsel %vm3830_vm2, 0, %v868_v52 }
 0x19a   : > { %v1128_v34 = vrot.slane %v1127_v13, 4  ;;  %v902_v45 = vsel %vm3839_vm5, 0, %v901_v25  ;;  %v1299_v22 = vrot.slane %v1291_v14, 5  ;;  %v1301_v59 = vrot.slane %v1288_v60, 4  ;;  %870 = vst [vmem:[#allocation2 + $0xb8] sm:$0x8] %v869_v44  ;;  %1454 = vrot.lane.b32.xlu1 %v4489_v24, %s3452_s13 }
 0x19b   : > { %v1133_v47 = vrot.slane %v1132_v53, 4  ;;  %v967_v61 = vsel %vm4015_vm9, %v959_v21, %v4094_v63  ;;  %903 = vst [vmem:[#allocation2 + $0xc4] sm:$0x1] %v902_v45  ;;  %v4508_v41 = vcombine.low %v1172_v30, %v1180_v51  ;;  %v1293_v31 = vor.u32 %v1291_v14, %v1290_v23  ;;  %v5012_v53 = vld [vmem:[#allocation13_spill] sm:$0xff]  ;;  %v5013_v21 = vld [vmem:[#allocation15_spill] sm:$0xff]  ;;  %v5015_v44 = vld [vmem:[#allocation20_spill] sm:$0xff] }
 0x19c   : > { %v1130_v12 = vsel %vm4202_vm13, %v1128_v34, %v4145_v10  ;;  %v2704_v17 = vcombine.low %v958_v48, %v967_v61  ;;  %v1208_v39 = vsel %vm4202_vm13, %v1203_v7, %v4021_v8  ;;  %v1286_v46 = vrot.slane %v1281_v50, 4  ;;  %v5014_v34 = vld [vmem:[#allocation17_spill] sm:$0xff]  ;;  %v5016_v45 = vld [vmem:[#allocation22_spill] sm:$0xff] }
 0x19d   : > { %v1138_v63 = vsel %vm4202_vm13, %v1133_v47, %v3999_v55  ;;  %1444 = vrot.lane.b32.xlu0 %v4508_v41, %s3452_s13  ;;  %v1298_v37 = vrot.slane %v1297_v18, 4  ;;  %v1200_v30 = vsel %vm4202_vm13, %v1198_v15, %v4437_v42  ;;  %v1302_v10 = vor.u32 %v1301_v59, %v1299_v22  ;;  %v5018_v47 = vld [vmem:[#allocation25_spill] sm:$0xff] }
 0x19e   : > { %v2720_v54 = vcombine.low %v1130_v12, %v1138_v63  ;;  %v4524_v6 = vcombine.low %v1200_v30, %v1208_v39  ;;  %v1294_v8 = vsel %vm4015_vm9, %v1286_v46, %v1293_v31  ;;  %v1284_v16 = vor.u32 %v1282_v40, %v1281_v50  ;;  %v5019_v31 = vld [vmem:[#allocation24_spill] sm:$0xff] }
 0x19f   : > { %v1300_v60 = vsel %vm4202_vm13, %v1298_v37, %v1299_v22  ;;  %v1303_v51 = vrot.slane %v1302_v10, 4  ;;  %v4534_v42 = vcombine.low %v4379_v57, %v4402_v43  ;;  %v2732_v25 = vcombine.low %v4439_v11, %v4471_v9  ;;  %v5021_v10 = vld [vmem:[#allocation28_spill] sm:$0xff] }
 0x1a1   : > { %1448 = vrot.lane.b32.xlu0 %v4524_v6, %s3452_s13  ;;  %v940_v55 = vld [vmem:[#allocation2 + $0xb8] sm:$0xf] }
 0x1a2   : > { %v943_v35 = vld [vmem:[#allocation2 + $0xc4] sm:$0xf]  ;;  %v1274_v1 = vshrl.u32 %v940_v55, 16 }
 0x1a3   : > { %v1305_v14 = vshll.u32 %v943_v35, 16 }
 0x1a4   : > { %v2703_v15 = vrot.slane %v1274_v1, 11 }
 0x1a5   : > { %v1307_v52 = vrot.slane %v1305_v14, 5  ;;  %1464 = vrot.lane.b32.xlu0 %v4534_v42, %s3452_s13  ;;  %v5023_v14 = vld [vmem:[#allocation21_spill] sm:$0xff] }
 0x1a6   : > { %v1285_v7 = vsel %vm4015_vm9, %v2703_v15, %v1284_v16  ;;  %v5022_v16 = vld [vmem:[#allocation30_spill] sm:$0xff] }
 0x1a7   : > { %v1308_v40 = vsel %vm4202_vm13, %v1303_v51, %v1307_v52  ;;  %v4544_v50 = vcombine.low %v1285_v7, %v1294_v8  ;;  %v3280_v52 = vld [vmem:[%s4923_s3 + $0x108] sm:$0xff]   ;;  %v5024_v7 = vld [vmem:[#allocation16_spill] sm:$0xff] }
 0x1a8   : > { %v4546_v23 = vcombine.low %v1300_v60, %v1308_v40 }
 0x1a9   : > { %1466 = vrot.lane.b32.xlu0 %v2732_v25, %s3452_s13  ;;  %s2543_s13 = sadd.s32 %s2827_s17, %s2798_s20  ;;  %s3329_s17 = sshll.u32 %s3454_s15, 4  ;;  %s3330_s17 = int_to_ptr.vmem [resolvable:$false] %s3329_s17 }
 0x1aa   : > { %s2799_s8 = sshll.u32 %s2543_s13, 7  ;;  %s3331_s20 = scalar_lea.vmem %s3330_s17, 8192 }
 0x1ab   : > { %s4853_s18 = scalar_lea.hbm %s5030_s12, %s2799_s8  ;;  %p3332_p3 = scmp.lt.s32.totalorder %s4847_s30, %s3330_s17 }
 0x1ac   : > { %p3333_p11 = scmp.lt.s32.totalorder %s3331_s20, %s3325_s7 }
 0x1ae   : > { %p3334_p13 = por %p3333_p11, %p3332_p3 }
 0x1b0   : > { %p3335_p5 = pnand %p3334_p13, %p3328_p9 }
 0x1cd   : > { %v1417_v57 = vpop.permute.xlu0 %1416 }
 0x1ce   : > { %v1506_v43 = vsel %vm1471_vm14, %v2720_v54, %v1417_v57  ;;  %v5025_v57 = vld [vmem:[#allocation23_spill] sm:$0xff] }
 0x1cf   : > { %1921 = vmatprep.mubr.bf16.mxu0 %v1506_v43 }
 0x1d1   : > { %v1374_v13 = vpop.permute.xlu0 %1373 }
 0x1d2   : > { %v1474_v11 = vsel %vm1471_vm14, %v2704_v17, %v1374_v13  ;;  %v3281_v13 = vld [vmem:[%s4923_s3 + $0x110] sm:$0xff]  }
 0x1d3   : > { %1922 = vmatmul.mubr.bf16.vlgmr.msra.gmra.mrb[32].mxu0 %v1474_v11  ;;  %v3282_v11 = vld [vmem:[%s4923_s3 + $0x118] sm:$0xff]  }
 0x1d4   : > { %3001 = vmatpush3.bf16.msra.mxu0 %v4004_v56 }
 0x1d5   : > { %v1419_v5 = vpop.permute.xlu1 %1418  ;;  %3002 = vmatprep.subr.bf16.mxu0 %v4046_v36 }
 0x1d6   : > { %v1510_v62 = vsel %vm1471_vm14, %v4465_v38, %v1419_v5 }
 0x1d7   : > { %1929 = vmatprep.mubr.bf16.mxu0 %v1510_v62  ;;  %v5026_v62 = vld [vmem:[#allocation18_spill] sm:$0xff] }
 0x1d8   : > { %3003 = vmatpush3.bf16.msra.mxu0 %v4066_v58  ;;  %v5017_v58 = vld [vmem:[#allocation14_spill] sm:$0xff] }
 0x1d9   : > { %v1376_v9 = vpop.permute.xlu1 %1375  ;;  %3004 = vmatprep.subr.bf16.mxu0 %v5013_v21 }
 0x1da   : > { %v1478_v48 = vsel %vm1471_vm14, %v5012_v53, %v1376_v9  ;;  %v5027_v53 = vld [vmem:[#allocation26_spill] sm:$0xff] }
 0x1db   : > { %1930 = vmatmul.mubr.bf16.gmra.mrb[36].mxu0 %v1478_v48 }
 0x1dc   : > { %3005 = vmatpush3.bf16.msra.mxu0 %v5014_v34  ;;  %v5028_v34 = vld [vmem:[#allocation27_spill] sm:$0xff] }
 0x1dd   : > { %v1378_v18 = vpop.permute.xlu1 %1377  ;;  %3006 = vmatprep.subr.bf16.mxu0 %v5015_v44 }
 0x1de   : > { %v1482_v22 = vsel %vm1471_vm14, %v5017_v58, %v1378_v18  ;;  %v3294_v58 = vld [vmem:[%s4925_s5 + $0x34] ss:$8 sps:$4 sm:$0xff]  }
 0x1df   : > { %v1421_v56 = vpop.permute.xlu0 %1420 }
 0x1e0   : > { %v1514_v38 = vsel %vm1471_vm14, %v4275_v0, %v1421_v56  ;;  %3007 = vmatpush3.bf16.msra.mxu0 %v5016_v45 }
 0x1e1   : > { %1937 = vmatprep.mubr.bf16.mxu0 %v1514_v38  ;;  %v1380_v36 = vpop.permute.xlu1 %1379  ;;  %3008 = vmatprep.subr.bf16.mxu0 %v4226_v28  ;;  %v5020_v28 = vld [vmem:[#allocation19_spill] sm:$0xff] }
 0x1e2   : > { %v1486_v39 = vsel %vm1471_vm14, %v5020_v28, %v1380_v36 }
 0x1e3   : > { %1938 = vmatmul.mubr.bf16.gmra.mrb[40].mxu0 %v1482_v22 }
 0x1e4   : > { %3009 = vmatpush3.bf16.msra.mxu0 %v5018_v47 }
 0x1e5   : > { %v1382_v59 = vpop.permute.xlu1 %1381  ;;  %3010 = vmatprep.subr.bf16.mxu0 %v4305_v27  ;;  %v3279_v27 = vld [vmem:[%s4923_s3 + $0x100] sm:$0xff]  }
 0x1e6   : > { %v1490_v12 = vsel %vm1471_vm14, %v5019_v31, %v1382_v59 }
 0x1e7   : > { %v1423_v61 = vpop.permute.xlu0 %1422  ;;  %2034 = vmatprep.mubr.bf16.mxu1 %v1490_v12 }
 0x1e8   : > { %v1518_v17 = vsel %vm1471_vm14, %v4508_v41, %v1423_v61  ;;  %3011 = vmatpush3.bf16.msra.mxu0 %v4315_v29 }
 0x1e9   : > { %1945 = vmatprep.mubr.bf16.mxu0 %v1518_v17  ;;  %3012 = vmatprep.subr.bf16.mxu0 %v4353_v33 }
 0x1eb   : > { %1946 = vmatmul.mubr.bf16.gmra.mrb[44].mxu0 %v1486_v39 }
 0x1ec   : > { %3013 = vmatpush3.bf16.msra.mxu0 %v4360_v3  ;;  %v1384_v3 = vpop.permute.xlu1 %1383 }
 0x1ed   : > { %3014 = vmatprep.subr.bf16.mxu0 %v4419_v4  ;;  %v1494_v4 = vsel %vm1471_vm14, %v4298_v49, %v1384_v3 }
 0x1ef   : > { %v1425_v63 = vpop.permute.xlu0 %1424 }
 0x1f0   : > { %v1522_v54 = vsel %vm1471_vm14, %v4372_v32, %v1425_v63  ;;  %3015 = vmatpush3.bf16.msra.mxu0 %v4426_v20 }
 0x1f1   : > { %1953 = vmatprep.mubr.bf16.mxu0 %v1522_v54  ;;  %3076 = vmatprep.subr.bf16.mxu0 %v3279_v27  ;;  %v1386_v30 = vpop.permute.xlu1 %1385 }
 0x1f2   : > { %v1498_v20 = vsel %vm1471_vm14, %v5021_v10, %v1386_v30 }
 0x1f3   : > { %1954 = vmatmul.mubr.bf16.gmra.mrb[48].mxu0 %v1490_v12 }
 0x1f7   : > { %v1427_v29 = vpop.permute.xlu0 %1426 }
 0x1f8   : > { %v1526_v33 = vsel %vm1471_vm14, %v4524_v6, %v1427_v29  ;;  %v1388_v55 = vpop.permute.xlu1 %1387 }
 0x1f9   : > { %1961 = vmatprep.mubr.bf16.mxu0 %v1526_v33  ;;  %v1502_v49 = vsel %vm1471_vm14, %v5022_v16, %v1388_v55 }
 0x1fb   : > { %1962 = vmatmul.mubr.bf16.gmra.mrb[52].mxu0 %v1494_v4 }
 0x1fc   : > { %v1443_v1 = vpop.permute.xlu1 %1442 }
 0x1fd   : > { %v1542_v9 = vsel %vm1471_vm14, %v5026_v62, %v1443_v1 }
 0x1fe   : > { %v1429_v46 = vpop.permute.xlu0 %1428 }
 0x1ff   : > { %v1530_v37 = vsel %vm1471_vm14, %v4431_v26, %v1429_v46 }
 0x200   : > { %1969 = vmatprep.mubr.bf16.mxu0 %v1530_v37  ;;  %v1447_v25 = vpop.permute.xlu1 %1446 }
 0x201   : > { %v1550_v43 = vsel %vm1471_vm14, %v5025_v57, %v1447_v25 }
 0x203   : > { %1970 = vmatmul.mubr.bf16.gmra.mrb[56].mxu0 %v1498_v20 }
 0x204   : > { %v1451_v21 = vpop.permute.xlu1 %1450 }
 0x205   : > { %v1558_v56 = vsel %vm1471_vm14, %v5028_v34, %v1451_v21 }
 0x207   : > { %v1431_v8 = vpop.permute.xlu0 %1430 }
 0x208   : > { %v1534_v60 = vsel %vm1471_vm14, %v4463_v19, %v1431_v8  ;;  %v1453_v44 = vpop.permute.xlu1 %1452 }
 0x209   : > { %1977 = vmatprep.mubr.bf16.mxu0 %v1534_v60 }
 0x20b   : > { %v1441_v35 = vpop.permute.xlu0 %1440  ;;  %1978 = vmatmul.mubr.bf16.gmra.mrb[60].mxu0 %v1502_v49 }
 0x20c   : > { %2018 = vmatprep.mubr.bf16.mxu0 %v1482_v22  ;;  %v1538_v40 = vsel %vm1471_vm14, %v5024_v7, %v1441_v35  ;;  %v1455_v45 = vpop.permute.xlu1 %1454  ;;  %v3453_v22 = vmov 0  }
 0x20f   : > { %v1445_v51 = vpop.permute.xlu0 %1444 }
 0x210   : > { %v1546_v15 = vsel %vm1471_vm14, %v5023_v14, %v1445_v51 }
 0x211   : > { %2035 = vmatmul.mubr.bf16.vlgmr.msra.gmra.mrb[8].mxu1 %v1546_v15 }
 0x212   : > { %2042 = vmatprep.mubr.bf16.mxu1 %v1494_v4 }
 0x213   : > { %2019 = vmatmul.mubr.bf16.vlgmr.msra.gmra.mrb[64].mxu0 %v1538_v40  ;;  %v1449_v5 = vpop.permute.xlu0 %1448 }
 0x214   : > { %3077 = vmatpush3.bf16.msra.mxu0 %v3279_v27  ;;  %2026 = vmatprep.mubr.bf16.mxu0 %v1486_v39  ;;  %v1554_v48 = vsel %vm1471_vm14, %v5027_v53, %v1449_v5 }
 0x215   : > { %3078 = vmatprep.subr.bf16.mxu0 %v3280_v52 }
 0x217   : > { %v1465_v18 = vpop.permute.xlu0 %1464 }
 0x218   : > { %3079 = vmatpush3.bf16.msra.mxu0 %v3280_v52 }
 0x219   : > { %2043 = vmatmul.mubr.bf16.gmra.mrb[12].mxu1 %v1550_v43  ;;  %3080 = vmatprep.subr.bf16.mxu0 %v3281_v13 }
 0x21a   : > { %2050 = vmatprep.mubr.bf16.mxu1 %v1498_v20 }
 0x21b   : > { %2027 = vmatmul.mubr.bf16.gmra.mrb[68].mxu0 %v1542_v9  ;;  %v1467_v38 = vpop.permute.xlu0 %1466 }
 0x21c   : > { %3081 = vmatpush3.bf16.msra.mxu0 %v3281_v13  ;;  %3084 = vmatprep.mubr.msk.bf16.mxu0 %vm1471_vm14, %v4275_v0  ;;  %v1570_v0 = vsel %vm1471_vm14, %v4454_v2, %v1465_v18  ;;  %v1566_v2 = vsel %vm1471_vm14, %v4534_v42, %v1455_v45  ;;  %v3289_v42 = vld [vmem:[%s4925_s5 + $0x20] ss:$8 sps:$4 sm:$0xff]  }
 0x21d   : > { %3082 = vmatprep.subr.bf16.mxu0 %v3282_v11 }
 0x220   : > { %3083 = vmatpush3.bf16.msra.mxu0 %v3282_v11 }
 0x221   : > { %2051 = vmatmul.mubr.bf16.gmra.mrb[16].mxu1 %v1554_v48 }
 0x222   : > { %2058 = vmatprep.mubr.bf16.mxu1 %v1502_v49 }
 0x223   : > { %3085 = vmatmul.mubr.msk.bf16.vlgmr.msra.gmra.mrb[72].mxu0 %vm1471_vm14, %v4508_v41  ;;  %v5029_v41 = vld [vmem:[#allocation29_spill] sm:$0xff] }
 0x224   : > { %3088 = vmatprep.mubr.msk.bf16.mxu0 %vm1471_vm14, %v4372_v32  ;;  %v1562_v36 = vsel %vm1471_vm14, %v5029_v41, %v1453_v44  ;;  %v1574_v32 = vsel %vm1471_vm14, %v4544_v50, %v1467_v38  ;;  %v3291_v50 = vld [vmem:[%s4925_s5 + $0x24] ss:$8 sps:$4 sm:$0xff]   ;;  %v4688_v44 = vld [vmem:[%s4924_s4] ss:$0 sm:$0xff] }
 0x229   : > { %2059 = vmatmul.mubr.bf16.gmra.mrb[20].mxu1 %v1558_v56 }
 0x22a   : > { %2066 = vmatprep.mubr.bf16.mxu1 %v1570_v0 }
 0x22b   : > { %3089 = vmatmul.mubr.msk.bf16.gmra.mrb[76].mxu0 %vm1471_vm14, %v4524_v6  ;;  %v3285_v6 = vld [vmem:[%s4925_s5 + $0x4] ss:$8 sps:$4 sm:$0xff]  }
 0x22c   : > { %3092 = vmatprep.mubr.msk.bf16.mxu0 %vm1471_vm14, %v4431_v26  ;;  %v3283_v26 = vld [vmem:[%s4925_s5] ss:$8 sps:$4 sm:$0xff]   ;;  %2288 = vmatprep.subr.bf16.mxu1 %v3285_v6 }
 0x22d   : > { %2289 = vmatpush1.bf16.msra.mxu1 %v3283_v26 }
 0x231   : > { %2067 = vmatmul.mubr.bf16.gmra.mrb[24].mxu1 %v1562_v36 }
 0x232   : > { %2074 = vmatprep.mubr.bf16.mxu1 %v1574_v32 }
 0x233   : > { %3093 = vmatmul.mubr.msk.bf16.gmra.mrb[80].mxu0 %vm1471_vm14, %v4463_v19  ;;  %v3286_v19 = vld [vmem:[%s4925_s5 + $0x10] ss:$8 sps:$4 sm:$0xff]  }
 0x234   : > { %3096 = vmatprep.mubr.msk.bf16.mxu0 %vm1471_vm14, %v4489_v24  ;;  %v3288_v24 = vld [vmem:[%s4925_s5 + $0x14] ss:$8 sps:$4 sm:$0xff]  }
 0x235   : > { %2290 = vmatprep.subr.bf16.mxu1 %v3288_v24 }
 0x236   : > { %2291 = vmatpush1.bf16.msra.mxu1 %v3286_v19 }
 0x237   : > { %2292 = vmatprep.subr.bf16.mxu1 %v3291_v50 }
 0x239   : > { %2075 = vmatmul.mubr.bf16.gmra.mrb[28].mxu1 %v1566_v2 }
 0x23a   : > { %2293 = vmatpush1.bf16.msra.mxu1 %v3289_v42  ;;  %2320 = vmatprep.mubr.bf16.mxu1 %v3453_v22 }
 0x23b   : > { %3097 = vmatmul.mubr.msk.bf16.gmra.mrb[84].mxu0 %vm1471_vm14, %v4546_v23  ;;  %v3292_v23 = vld [vmem:[%s4925_s5 + $0x30] ss:$8 sps:$4 sm:$0xff]   ;;  %2294 = vmatprep.subr.bf16.mxu1 %v3294_v58 }
 0x23e   : > { %2295 = vmatpush1.bf16.msra.mxu1 %v3292_v23 }
 0x2a6   : > { %v2952_v59 = vpop.f32.mrb[32].mxu0 }
 0x2a7   : > { %v2953_v47 = vpop.f32.mrb[33].mxu0 }
 0x2a8   : > { %v2954_v61 = vadd.f32 %v2953_v47, %v2952_v59  ;;  %v2955_v31 = vpop.f32.mrb[34].mxu0 }
 0x2a9   : > { %v2956_v12 = vpop.f32.mrb[35].mxu0 }
 0x2aa   : > { %v2957_v17 = vadd.f32 %v2956_v12, %v2955_v31  ;;  %v1924_v23 = vadd.f32 %v2954_v61, %v4688_v44 }
 0x2ac   : > { %v1927_v12 = vadd.f32 %v2957_v17, %v4688_v44 }
 0x2ae   : > { %v2958_v28 = vpop.f32.mrb[36].mxu0 }
 0x2af   : > { %v2959_v39 = vpop.f32.mrb[37].mxu0 }
 0x2b0   : > { %v4667_v63 = vadd.f32 %v2959_v39, %v2958_v28  ;;  %v2961_v27 = vpop.f32.mrb[38].mxu0 }
 0x2b1   : > { %v2962_v54 = vpop.f32.mrb[39].mxu0 }
 0x2b2   : > { %v4669_v29 = vadd.f32 %v2962_v54, %v2961_v27 }
 0x2b6   : > { %v2964_v33 = vpop.f32.mrb[40].mxu0 }
 0x2b7   : > { %v2965_v3 = vpop.f32.mrb[41].mxu0 }
 0x2b8   : > { %v2966_v4 = vadd.f32 %v2965_v3, %v2964_v33  ;;  %v2967_v46 = vpop.f32.mrb[42].mxu0 }
 0x2b9   : > { %v2968_v37 = vpop.f32.mrb[43].mxu0 }
 0x2ba   : > { %v2969_v30 = vadd.f32 %v2968_v37, %v2967_v46  ;;  %v1940_v36 = vadd.f32 %v2966_v4, %v4688_v44 }
 0x2bc   : > { %v1943_v26 = vadd.f32 %v2969_v30, %v4688_v44 }
 0x2be   : > { %v2970_v10 = vpop.f32.mrb[44].mxu0 }
 0x2bf   : > { %v2971_v20 = vpop.f32.mrb[45].mxu0 }
 0x2c0   : > { %v2972_v8 = vadd.f32 %v2971_v20, %v2970_v10  ;;  %v2973_v60 = vpop.f32.mrb[46].mxu0 }
 0x2c1   : > { %v2974_v55 = vpop.f32.mrb[47].mxu0 }
 0x2c2   : > { %v2975_v35 = vadd.f32 %v2974_v55, %v2973_v60  ;;  %v1948_v54 = vadd.f32 %v2972_v8, %v4688_v44  ;;  %v1932_v55 = vadd.f32 %v4667_v63, %v4688_v44  ;;  %v1935_v8 = vadd.f32 %v4669_v29, %v4688_v44 }
 0x2c4   : > { %v1951_v37 = vadd.f32 %v2975_v35, %v4688_v44 }
 0x2c6   : > { %v2976_v16 = vpop.f32.mrb[48].mxu0 }
 0x2c7   : > { %v2977_v49 = vpop.f32.mrb[49].mxu0 }
 0x2c8   : > { %v4671_v1 = vadd.f32 %v2977_v49, %v2976_v16  ;;  %v2979_v51 = vpop.f32.mrb[50].mxu0 }
 0x2c9   : > { %v2980_v14 = vpop.f32.mrb[51].mxu0 }
 0x2ca   : > { %v4673_v15 = vadd.f32 %v2980_v14, %v2979_v51  ;;  %v1956_v35 = vadd.f32 %v4671_v1, %v4688_v44 }
 0x2cc   : > { %v1959_v63 = vadd.f32 %v4673_v15, %v4688_v44 }
 0x2ce   : > { %v2982_v52 = vpop.f32.mrb[52].mxu0 }
 0x2cf   : > { %v2983_v25 = vpop.f32.mrb[53].mxu0 }
 0x2d0   : > { %v4675_v7 = vadd.f32 %v2983_v25, %v2982_v52  ;;  %v2985_v40 = vpop.f32.mrb[54].mxu0 }
 0x2d1   : > { %v2986_v57 = vpop.f32.mrb[55].mxu0 }
 0x2d2   : > { %v4677_v43 = vadd.f32 %v2986_v57, %v2985_v40 }
 0x2d6   : > { %v2988_v13 = vpop.f32.mrb[56].mxu0 }
 0x2d7   : > { %v2989_v11 = vpop.f32.mrb[57].mxu0 }
 0x2d8   : > { %v4679_v5 = vadd.f32 %v2989_v11, %v2988_v13  ;;  %v2991_v62 = vpop.f32.mrb[58].mxu0 }
 0x2d9   : > { %v2992_v9 = vpop.f32.mrb[59].mxu0 }
 0x2da   : > { %v4681_v53 = vadd.f32 %v2992_v9, %v2991_v62 }
 0x2de   : > { %v2994_v48 = vpop.f32.mrb[60].mxu0 }
 0x2df   : > { %v2995_v21 = vpop.f32.mrb[61].mxu0 }
 0x2e0   : > { %v4683_v18 = vadd.f32 %v2995_v21, %v2994_v48  ;;  %v2997_v34 = vpop.f32.mrb[62].mxu0 }
 0x2e1   : > { %v2998_v56 = vpop.f32.mrb[63].mxu0 }
 0x2e2   : > { %v4690_v38 = vadd.f32 %v2998_v56, %v2997_v34 }
 0x2e4   : > { %v3028_v0 = vpop.f32.mrb[8].mxu1 }
 0x2e5   : > { %v3029_v41 = vpop.f32.mrb[9].mxu1 }
 0x2e6   : > { %v3030_v32 = vadd.f32 %v3029_v41, %v3028_v0  ;;  %v3031_v45 = vpop.f32.mrb[10].mxu1  ;;  %v3016_v24 = vpop.f32.mrb[64].mxu0 }
 0x2e7   : > { %v3032_v2 = vpop.f32.mrb[11].mxu1  ;;  %v3017_v42 = vpop.f32.mrb[65].mxu0 }
 0x2e8   : > { %v3033_v6 = vadd.f32 %v3032_v2, %v3031_v45  ;;  %v4694_v19 = vadd.f32 %v3030_v32, %v1940_v36  ;;  %v3018_v58 = vadd.f32 %v3017_v42, %v3016_v24  ;;  %v3019_v59 = vpop.f32.mrb[66].mxu0  ;;  %v1964_v2 = vadd.f32 %v4675_v7, %v4688_v44 }
 0x2e9   : > { %v3020_v47 = vpop.f32.mrb[67].mxu0 }
 0x2ea   : > { %v4696_v50 = vadd.f32 %v3033_v6, %v1943_v26  ;;  %v3021_v28 = vadd.f32 %v3020_v47, %v3019_v59  ;;  %v2021_v27 = vadd.f32 %v3018_v58, %v1924_v23  ;;  %v1967_v59 = vadd.f32 %v4677_v43, %v4688_v44 }
 0x2ec   : > { %v3034_v31 = vpop.f32.mrb[12].mxu1  ;;  %v2024_v46 = vadd.f32 %v3021_v28, %v1927_v12 }
 0x2ed   : > { %v3035_v39 = vpop.f32.mrb[13].mxu1 }
 0x2ee   : > { %v3036_v33 = vadd.f32 %v3035_v39, %v3034_v31  ;;  %v3037_v3 = vpop.f32.mrb[14].mxu1  ;;  %v3022_v61 = vpop.f32.mrb[68].mxu0 }
 0x2ef   : > { %v3038_v4 = vpop.f32.mrb[15].mxu1  ;;  %v3023_v20 = vpop.f32.mrb[69].mxu0 }
 0x2f0   : > { %v3039_v30 = vadd.f32 %v3038_v4, %v3037_v3  ;;  %v2045_v10 = vadd.f32 %v3036_v33, %v1948_v54  ;;  %v3024_v17 = vadd.f32 %v3023_v20, %v3022_v61  ;;  %v3025_v16 = vpop.f32.mrb[70].mxu0  ;;  %v1972_v61 = vadd.f32 %v4679_v5, %v4688_v44 }
 0x2f1   : > { %v3026_v49 = vpop.f32.mrb[71].mxu0 }
 0x2f2   : > { %v2048_v60 = vadd.f32 %v3039_v30, %v1951_v37  ;;  %v3027_v14 = vadd.f32 %v3026_v49, %v3025_v16  ;;  %v2029_v25 = vadd.f32 %v3024_v17, %v1932_v55 }
 0x2f4   : > { %v3040_v51 = vpop.f32.mrb[16].mxu1  ;;  %v2032_v11 = vadd.f32 %v3027_v14, %v1935_v8 }
 0x2f5   : > { %v3041_v52 = vpop.f32.mrb[17].mxu1 }
 0x2f6   : > { %v3042_v40 = vadd.f32 %v3041_v52, %v3040_v51  ;;  %v3043_v57 = vpop.f32.mrb[18].mxu1  ;;  %v3086_v48 = vpop.f32.mrb[72].mxu0 }
 0x2f7   : > { %v3044_v13 = vpop.f32.mrb[19].mxu1  ;;  %v2126_v21 = vadd.f32 %v3086_v48, %v2029_v25  ;;  %v2117_v34 = vpop.f32.mrb[73].mxu0 }
 0x2f8   : > { %v3045_v62 = vadd.f32 %v3044_v13, %v3043_v57  ;;  %v2053_v9 = vadd.f32 %v3042_v40, %v1956_v35  ;;  %v2118_v29 = vadd.f32 %v2117_v34, %v2021_v27  ;;  %v3087_v0 = vpop.f32.mrb[74].mxu0 }
 0x2f9   : > { %v2129_v41 = vadd.f32 %v3087_v0, %v2032_v11  ;;  %v2120_v36 = vpop.f32.mrb[75].mxu0  ;;  %v2182_v26 = vmax.f32 %v2126_v21, 0.0 }
 0x2fa   : > { %v2056_v56 = vadd.f32 %v3045_v62, %v1959_v63  ;;  %v2121_v45 = vadd.f32 %v2120_v36, %v2024_v46  ;;  %v2180_v42 = vmax.f32 %v2118_v29, 0.0 }
 0x2fb   : > { %v2183_v6 = vmax.f32 %v2129_v41, 0.0 }
 0x2fc   : > { %v3046_v32 = vpop.f32.mrb[20].mxu1  ;;  %v2181_v23 = vmax.f32 %v2121_v45, 0.0 }
 0x2fd   : > { %v3047_v1 = vpop.f32.mrb[21].mxu1  ;;  %v2197_v47 = vpack.c.bf16 %v2183_v6, %v2182_v26 }
 0x2fe   : > { %v3048_v24 = vadd.f32 %v3047_v1, %v3046_v32  ;;  %v3049_v15 = vpop.f32.mrb[22].mxu1  ;;  %v2196_v28 = vpack.c.bf16 %v2181_v23, %v2180_v42  ;;  %v3090_v39 = vpop.f32.mrb[76].mxu0  ;;  %v1983_v32 = vadd.f32 %v4690_v38, %v4688_v44 }
 0x2ff   : > { %v3050_v58 = vpop.f32.mrb[23].mxu1  ;;  %v2142_v27 = vadd.f32 %v3090_v39, %v2045_v10  ;;  %v2133_v54 = vpop.f32.mrb[77].mxu0  ;;  %v2214_v39 = vlaneseq }
 0x300   : > { %v3051_v31 = vadd.f32 %v3050_v58, %v3049_v15  ;;  %v2061_v12 = vadd.f32 %v3048_v24, %v1964_v2  ;;  %v2134_v7 = vadd.f32 %v2133_v54, %v4694_v19  ;;  %v3091_v3 = vpop.f32.mrb[78].mxu0  ;;  %2787 = vmatmul.mubr.msk.bf16.vlgmr.msra.gmra.mrb[32].mxu1 %vm1471_vm14, %v2196_v28 }
 0x301   : > { %v2145_v4 = vadd.f32 %v3091_v3, %v2048_v60  ;;  %v2136_v46 = vpop.f32.mrb[79].mxu0  ;;  %2330 = vmatprep.mubr.bf16.mxu1 %v3453_v22  ;;  %v2186_v20 = vmax.f32 %v2142_v27, 0.0  ;;  %v1975_v60 = vadd.f32 %v4681_v53, %v4688_v44  ;;  %v1980_v53 = vadd.f32 %v4683_v18, %v4688_v44 }
 0x302   : > { %v2064_v33 = vadd.f32 %v3051_v31, %v1967_v59  ;;  %v2137_v43 = vadd.f32 %v2136_v46, %v4696_v50  ;;  %v2184_v16 = vmax.f32 %v2134_v7, 0.0  ;;  %v2215_v27 = vshrl.u32 %v2214_v39, 7 }
 0x303   : > { %v2187_v10 = vmax.f32 %v2145_v4, 0.0 }
 0x304   : > { %v3052_v37 = vpop.f32.mrb[24].mxu1  ;;  %v2185_v19 = vmax.f32 %v2137_v43, 0.0  ;;  %v2216_v54 = vsub.s32 0, %v2215_v27  ;;  %v2220_v7 = vsub.s32 1, %v2215_v27 }
 0x305   : > { %v3053_v30 = vpop.f32.mrb[25].mxu1  ;;  %v2199_v51 = vpack.c.bf16 %v2187_v10, %v2186_v20  ;;  %v2403_v10 = vld [vmem:[%s3712_s22 + $0x10] sm:$0xff] }
 0x306   : > { %v3054_v55 = vadd.f32 %v3053_v30, %v3052_v37  ;;  %v3055_v17 = vpop.f32.mrb[26].mxu1  ;;  %v2198_v52 = vpack.c.bf16 %v2185_v19, %v2184_v16  ;;  %v3094_v25 = vpop.f32.mrb[80].mxu0  ;;  %v2401_v37 = vld [vmem:[%s3712_s22] sm:$0xff]  ;;  %v2402_v30 = vld [vmem:[%s3712_s22 + $0x8] sm:$0xff]  ;;  %v2404_v19 = vld [vmem:[%s3712_s22 + $0x18] sm:$0xff] }
 0x307   : > { %v3056_v49 = vpop.f32.mrb[27].mxu1  ;;  %v2158_v50 = vadd.f32 %v3094_v25, %v2061_v12  ;;  %v2149_v35 = vpop.f32.mrb[81].mxu0 }
 0x308   : > { %v3057_v8 = vadd.f32 %v3056_v49, %v3055_v17  ;;  %v2069_v14 = vadd.f32 %v3054_v55, %v1972_v61  ;;  %v2150_v57 = vadd.f32 %v2149_v35, %v2053_v9  ;;  %v3095_v5 = vpop.f32.mrb[82].mxu0  ;;  %2788 = vmatmul.mubr.msk.bf16.gmra.mrb[36].mxu1 %vm1471_vm14, %v2197_v47 }
 0x309   : > { %v2161_v13 = vadd.f32 %v3095_v5, %v2064_v33  ;;  %v2152_v11 = vpop.f32.mrb[83].mxu0  ;;  %2340 = vmatprep.mubr.bf16.mxu1 %v3453_v22  ;;  %v2190_v21 = vmax.f32 %v2158_v50, 0.0  ;;  %v2212_v33 = vld [vmem:[%s4926_s6] sm:$0x3] }
 0x30a   : > { %v2072_v40 = vadd.f32 %v3057_v8, %v1975_v60  ;;  %v2153_v62 = vadd.f32 %v2152_v11, %v2056_v56  ;;  %v2188_v41 = vmax.f32 %v2150_v57, 0.0  ;;  %v4742_v3 = vrot.slane %v2212_v33, %v2216_v54 }
 0x30b   : > { %v2191_v34 = vmax.f32 %v2161_v13, 0.0  ;;  %v4745_v4 = vrot.slane %v2212_v33, %v2220_v7  ;;  %v2406_v13 = vld [vmem:[%s3712_s22 + $0x28] sm:$0xff]  ;;  %v2413_v7 = vld [vmem:[%s3712_s22 + $0x60] sm:$0xff] }
 0x30c   : > { %v3058_v63 = vpop.f32.mrb[28].mxu1  ;;  %v2189_v36 = vmax.f32 %v2153_v62, 0.0  ;;  %v2407_v62 = vld [vmem:[%s3712_s22 + $0x30] sm:$0xff] }
 0x30d   : > { %v3059_v48 = vpop.f32.mrb[29].mxu1  ;;  %v2201_v45 = vpack.c.bf16 %v2191_v34, %v2190_v21  ;;  %v2408_v34 = vld [vmem:[%s3712_s22 + $0x38] sm:$0xff] }
 0x30e   : > { %v3060_v29 = vadd.f32 %v3059_v48, %v3058_v63  ;;  %v3061_v0 = vpop.f32.mrb[30].mxu1  ;;  %v2200_v26 = vpack.c.bf16 %v2189_v36, %v2188_v41  ;;  %v3098_v6 = vpop.f32.mrb[84].mxu0 }
 0x30f   : > { %v3062_v9 = vpop.f32.mrb[31].mxu1  ;;  %v2165_v24 = vpop.f32.mrb[85].mxu0 }
 0x310   : > { %v3063_v1 = vadd.f32 %v3062_v9, %v3061_v0  ;;  %v2077_v2 = vadd.f32 %v3060_v29, %v1980_v53  ;;  %v2166_v42 = vadd.f32 %v2165_v24, %v2069_v14  ;;  %v3099_v18 = vpop.f32.mrb[86].mxu0  ;;  %2789 = vmatmul.mubr.msk.bf16.gmra.mrb[40].mxu1 %vm1471_vm14, %v2198_v52  ;;  %v2410_v24 = vld [vmem:[%s3712_s22 + $0x48] sm:$0xff] }
 0x311   : > { %v2168_v58 = vpop.f32.mrb[87].mxu0  ;;  %2350 = vmatprep.mubr.bf16.mxu1 %v3453_v22 }
 0x312   : > { %v2174_v56 = vadd.f32 %v3098_v6, %v2077_v2  ;;  %v2080_v15 = vadd.f32 %v3063_v1, %v1983_v32  ;;  %v2169_v59 = vadd.f32 %v2168_v58, %v2072_v40  ;;  %v2192_v44 = vmax.f32 %v2166_v42, 0.0  ;;  %v2405_v40 = vld [vmem:[%s3712_s22 + $0x20] sm:$0xff] }
 0x314   : > { %v2177_v23 = vadd.f32 %v3099_v18, %v2080_v15  ;;  %v2194_v47 = vmax.f32 %v2174_v56, 0.0  ;;  %v2193_v38 = vmax.f32 %v2169_v59, 0.0  ;;  %v2411_v18 = vld [vmem:[%s3712_s22 + $0x50] sm:$0xff] }
 0x316   : > { %v2195_v31 = vmax.f32 %v2177_v23, 0.0  ;;  %v2202_v28 = vpack.c.bf16 %v2193_v38, %v2192_v44 }
 0x318   : > { %v2203_v12 = vpack.c.bf16 %v2195_v31, %v2194_v47  ;;  %2790 = vmatmul.mubr.msk.bf16.gmra.mrb[44].mxu1 %vm1471_vm14, %v2199_v51  ;;  %v2412_v47 = vld [vmem:[%s3712_s22 + $0x58] sm:$0xff] }
 0x319   : > { %2360 = vmatprep.mubr.bf16.mxu1 %v3453_v22 }
 0x320   : > { %2791 = vmatmul.mubr.msk.bf16.gmra.mrb[48].mxu1 %vm1471_vm14, %v2200_v26  ;;  %v2409_v26 = vld [vmem:[%s3712_s22 + $0x40] sm:$0xff] }
 0x321   : > { %2370 = vmatprep.mubr.bf16.mxu1 %v3453_v22 }
 0x328   : > { %2792 = vmatmul.mubr.msk.bf16.gmra.mrb[52].mxu1 %vm1471_vm14, %v2201_v45 }
 0x329   : > { %2380 = vmatprep.mubr.bf16.mxu1 %v3453_v22 }
 0x330   : > { %2793 = vmatmul.mubr.msk.bf16.gmra.mrb[56].mxu1 %vm1471_vm14, %v2202_v28 }
 0x331   : > { %2390 = vmatprep.mubr.bf16.mxu1 %v3453_v22 }
 0x338   : > { %2794 = vmatmul.mubr.msk.bf16.gmra.mrb[60].mxu1 %vm1471_vm14, %v2203_v12 }
 0x3d3   : > { %v2322_v46 = vpop.f32.mrb[32].mxu1 }
 0x3d4   : > { %v2323_v22 = vadd.f32 %v2322_v46, %v4742_v3  ;;  %v2324_v43 = vpop.f32.mrb[33].mxu1 }
 0x3d5   : > { %v2325_v61 = vadd.f32 %v2324_v43, %v4745_v4  ;;  %v2326_v20 = vpop.f32.mrb[34].mxu1 }
 0x3d6   : > { %v2433_v55 = vadd.f32 %v2401_v37, %v2323_v22  ;;  %v2327_v17 = vadd.f32 %v2326_v20, %v4742_v3  ;;  %v2328_v16 = vpop.f32.mrb[35].mxu1  ;;  %v2414_v22 = vld [vmem:[%s3712_s22 + $0x68] sm:$0xff] }
 0x3d7   : > { %v2434_v49 = vadd.f32 %v2402_v30, %v2325_v61  ;;  %v2329_v60 = vadd.f32 %v2328_v16, %v4745_v4  ;;  %v2415_v61 = vld [vmem:[%s3712_s22 + $0x70] sm:$0xff] }
 0x3d8   : > { %v2465_v51 = vmax.f32 %v2433_v55, 0.0  ;;  %v2435_v8 = vadd.f32 %v2403_v10, %v2327_v17  ;;  %v2416_v17 = vld [vmem:[%s3712_s22 + $0x78] sm:$0xff] }
 0x3d9   : > { %v2466_v14 = vmax.f32 %v2434_v49, 0.0  ;;  %v2436_v52 = vadd.f32 %v2404_v19, %v2329_v60 }
 0x3da   : > { %2497 = vst [vmem:[%s4757_s10] sm:$0xff] %v2465_v51  ;;  %v2467_v25 = vmax.f32 %v2435_v8, 0.0 }
 0x3db   : > { %2498 = vst [vmem:[%s4757_s10 + $0x8] sm:$0xff] %v2466_v14  ;;  %v2468_v50 = vmax.f32 %v2436_v52, 0.0  ;;  %v2332_v35 = vpop.f32.mrb[36].mxu1 }
 0x3dc   : > { %2499 = vst [vmem:[%s4757_s10 + $0x10] sm:$0xff] %v2467_v25  ;;  %v2333_v57 = vadd.f32 %v2332_v35, %v4742_v3  ;;  %v2334_v5 = vpop.f32.mrb[37].mxu1 }
 0x3dd   : > { %2500 = vst [vmem:[%s4757_s10 + $0x18] sm:$0xff] %v2468_v50  ;;  %v2335_v11 = vadd.f32 %v2334_v5, %v4745_v4  ;;  %v2336_v63 = vpop.f32.mrb[38].mxu1  ;;  %v2417_v50 = vld [vmem:[%s3712_s22 + $0x80] sm:$0xff] }
 0x3de   : > { %v2437_v48 = vadd.f32 %v2405_v40, %v2333_v57  ;;  %v2337_v53 = vadd.f32 %v2336_v63, %v4742_v3  ;;  %v2338_v21 = vpop.f32.mrb[39].mxu1  ;;  %v2418_v57 = vld [vmem:[%s3712_s22 + $0x88] sm:$0xff] }
 0x3df   : > { %v2438_v29 = vadd.f32 %v2406_v13, %v2335_v11  ;;  %v2339_v0 = vadd.f32 %v2338_v21, %v4745_v4  ;;  %v2419_v11 = vld [vmem:[%s3712_s22 + $0x90] sm:$0xff] }
 0x3e0   : > { %v2469_v41 = vmax.f32 %v2437_v48, 0.0  ;;  %v2439_v36 = vadd.f32 %v2407_v62, %v2337_v53  ;;  %v2420_v53 = vld [vmem:[%s3712_s22 + $0x98] sm:$0xff] }
 0x3e1   : > { %v2470_v9 = vmax.f32 %v2438_v29, 0.0  ;;  %v2440_v32 = vadd.f32 %v2408_v34, %v2339_v0 }
 0x3e2   : > { %2501 = vst [vmem:[%s4757_s10 + $0x20] sm:$0xff] %v2469_v41  ;;  %v2471_v45 = vmax.f32 %v2439_v36, 0.0 }
 0x3e3   : > { %2502 = vst [vmem:[%s4757_s10 + $0x28] sm:$0xff] %v2470_v9  ;;  %v2472_v1 = vmax.f32 %v2440_v32, 0.0  ;;  %v2342_v2 = vpop.f32.mrb[40].mxu1 }
 0x3e4   : > { %2503 = vst [vmem:[%s4757_s10 + $0x30] sm:$0xff] %v2471_v45  ;;  %v2343_v6 = vadd.f32 %v2342_v2, %v4742_v3  ;;  %v2344_v56 = vpop.f32.mrb[41].mxu1 }
 0x3e5   : > { %2504 = vst [vmem:[%s4757_s10 + $0x38] sm:$0xff] %v2472_v1  ;;  %v2345_v15 = vadd.f32 %v2344_v56, %v4745_v4  ;;  %v2346_v42 = vpop.f32.mrb[42].mxu1  ;;  %v2421_v1 = vld [vmem:[%s3712_s22 + $0xa0] sm:$0xff] }
 0x3e6   : > { %v2441_v23 = vadd.f32 %v2409_v26, %v2343_v6  ;;  %v2347_v58 = vadd.f32 %v2346_v42, %v4742_v3  ;;  %v2348_v59 = vpop.f32.mrb[43].mxu1  ;;  %v2422_v6 = vld [vmem:[%s3712_s22 + $0xa8] sm:$0xff] }
 0x3e7   : > { %v2442_v31 = vadd.f32 %v2410_v24, %v2345_v15  ;;  %v2349_v44 = vadd.f32 %v2348_v59, %v4745_v4  ;;  %v2423_v15 = vld [vmem:[%s3712_s22 + $0xb0] sm:$0xff] }
 0x3e8   : > { %v2473_v38 = vmax.f32 %v2441_v23, 0.0  ;;  %v2443_v12 = vadd.f32 %v2411_v18, %v2347_v58  ;;  %v2424_v58 = vld [vmem:[%s3712_s22 + $0xb8] sm:$0xff] }
 0x3e9   : > { %v2474_v28 = vmax.f32 %v2442_v31, 0.0  ;;  %v2444_v39 = vadd.f32 %v2412_v47, %v2349_v44 }
 0x3ea   : > { %2505 = vst [vmem:[%s4757_s10 + $0x40] sm:$0xff] %v2473_v38  ;;  %v2475_v27 = vmax.f32 %v2443_v12, 0.0 }
 0x3eb   : > { %2506 = vst [vmem:[%s4757_s10 + $0x48] sm:$0xff] %v2474_v28  ;;  %v2476_v54 = vmax.f32 %v2444_v39, 0.0  ;;  %v2352_v33 = vpop.f32.mrb[44].mxu1 }
 0x3ec   : > { %2507 = vst [vmem:[%s4757_s10 + $0x50] sm:$0xff] %v2475_v27  ;;  %v2353_v46 = vadd.f32 %v2352_v33, %v4742_v3  ;;  %v2354_v37 = vpop.f32.mrb[45].mxu1 }
 0x3ed   : > { %2508 = vst [vmem:[%s4757_s10 + $0x58] sm:$0xff] %v2476_v54  ;;  %v2355_v43 = vadd.f32 %v2354_v37, %v4745_v4  ;;  %v2356_v30 = vpop.f32.mrb[46].mxu1  ;;  %v2425_v54 = vld [vmem:[%s3712_s22 + $0xc0] sm:$0xff] }
 0x3ee   : > { %v2445_v20 = vadd.f32 %v2413_v7, %v2353_v46  ;;  %v2357_v10 = vadd.f32 %v2356_v30, %v4742_v3  ;;  %v2358_v55 = vpop.f32.mrb[47].mxu1  ;;  %v2426_v46 = vld [vmem:[%s3712_s22 + $0xc8] sm:$0xff] }
 0x3ef   : > { %v2446_v16 = vadd.f32 %v2414_v22, %v2355_v43  ;;  %v2359_v19 = vadd.f32 %v2358_v55, %v4745_v4  ;;  %v2427_v43 = vld [vmem:[%s3712_s22 + $0xd0] sm:$0xff] }
 0x3f0   : > { %v2477_v49 = vmax.f32 %v2445_v20, 0.0  ;;  %v2447_v60 = vadd.f32 %v2415_v61, %v2357_v10  ;;  %v2428_v10 = vld [vmem:[%s3712_s22 + $0xd8] sm:$0xff] }
 0x3f1   : > { %v2478_v51 = vmax.f32 %v2446_v16, 0.0  ;;  %v2448_v8 = vadd.f32 %v2416_v17, %v2359_v19 }
 0x3f2   : > { %2509 = vst [vmem:[%s4757_s10 + $0x60] sm:$0xff] %v2477_v49  ;;  %v2479_v14 = vmax.f32 %v2447_v60, 0.0 }
 0x3f3   : > { %2510 = vst [vmem:[%s4757_s10 + $0x68] sm:$0xff] %v2478_v51  ;;  %v2480_v52 = vmax.f32 %v2448_v8, 0.0  ;;  %v2362_v25 = vpop.f32.mrb[48].mxu1 }
 0x3f4   : > { %2511 = vst [vmem:[%s4757_s10 + $0x70] sm:$0xff] %v2479_v14  ;;  %v2363_v35 = vadd.f32 %v2362_v25, %v4742_v3  ;;  %v2364_v40 = vpop.f32.mrb[49].mxu1 }
 0x3f5   : > { %2512 = vst [vmem:[%s4757_s10 + $0x78] sm:$0xff] %v2480_v52  ;;  %v2365_v5 = vadd.f32 %v2364_v40, %v4745_v4  ;;  %v2366_v13 = vpop.f32.mrb[50].mxu1  ;;  %v2429_v52 = vld [vmem:[%s3712_s22 + $0xe0] sm:$0xff] }
 0x3f6   : > { %v2449_v63 = vadd.f32 %v2417_v50, %v2363_v35  ;;  %v2367_v62 = vadd.f32 %v2366_v13, %v4742_v3  ;;  %v2368_v48 = vpop.f32.mrb[51].mxu1  ;;  %v2430_v35 = vld [vmem:[%s3712_s22 + $0xe8] sm:$0xff] }
 0x3f7   : > { %v2450_v21 = vadd.f32 %v2418_v57, %v2365_v5  ;;  %v2369_v34 = vadd.f32 %v2368_v48, %v4745_v4  ;;  %v2431_v5 = vld [vmem:[%s3712_s22 + $0xf0] sm:$0xff] }
 0x3f8   : > { %v2481_v29 = vmax.f32 %v2449_v63, 0.0  ;;  %v2451_v0 = vadd.f32 %v2419_v11, %v2367_v62  ;;  %v2432_v62 = vld [vmem:[%s3712_s22 + $0xf8] sm:$0xff] }
 0x3f9   : > { %v2482_v41 = vmax.f32 %v2450_v21, 0.0  ;;  %v2452_v36 = vadd.f32 %v2420_v53, %v2369_v34 }
 0x3fa   : > { %2513 = vst [vmem:[%s4757_s10 + $0x80] sm:$0xff] %v2481_v29  ;;  %v2483_v9 = vmax.f32 %v2451_v0, 0.0 }
 0x3fb   : > { %2514 = vst [vmem:[%s4757_s10 + $0x88] sm:$0xff] %v2482_v41  ;;  %v2484_v32 = vmax.f32 %v2452_v36, 0.0  ;;  %v2372_v45 = vpop.f32.mrb[52].mxu1 }
 0x3fc   : > { %2515 = vst [vmem:[%s4757_s10 + $0x90] sm:$0xff] %v2483_v9  ;;  %v2373_v2 = vadd.f32 %v2372_v45, %v4742_v3  ;;  %v2374_v26 = vpop.f32.mrb[53].mxu1 }
 0x3fd   : > { %2516 = vst [vmem:[%s4757_s10 + $0x98] sm:$0xff] %v2484_v32  ;;  %v2375_v56 = vadd.f32 %v2374_v26, %v4745_v4  ;;  %v2376_v24 = vpop.f32.mrb[54].mxu1 }
 0x3fe   : > { %v2453_v42 = vadd.f32 %v2421_v1, %v2373_v2  ;;  %v2377_v18 = vadd.f32 %v2376_v24, %v4742_v3  ;;  %v2378_v23 = vpop.f32.mrb[55].mxu1 }
 0x3ff   : > { %v2454_v59 = vadd.f32 %v2422_v6, %v2375_v56  ;;  %v2379_v47 = vadd.f32 %v2378_v23, %v4745_v4 }
 0x400   : > { %v2485_v31 = vmax.f32 %v2453_v42, 0.0  ;;  %v2455_v44 = vadd.f32 %v2423_v15, %v2377_v18 }
 0x401   : > { %v2486_v38 = vmax.f32 %v2454_v59, 0.0  ;;  %v2456_v12 = vadd.f32 %v2424_v58, %v2379_v47 }
 0x402   : > { %2517 = vst [vmem:[%s4757_s10 + $0xa0] sm:$0xff] %v2485_v31  ;;  %v2487_v28 = vmax.f32 %v2455_v44, 0.0 }
 0x403   : > { %2518 = vst [vmem:[%s4757_s10 + $0xa8] sm:$0xff] %v2486_v38  ;;  %v2488_v39 = vmax.f32 %v2456_v12, 0.0  ;;  %v2382_v27 = vpop.f32.mrb[56].mxu1 }
 0x404   : > { %2519 = vst [vmem:[%s4757_s10 + $0xb0] sm:$0xff] %v2487_v28  ;;  %v2383_v33 = vadd.f32 %v2382_v27, %v4742_v3  ;;  %v2384_v7 = vpop.f32.mrb[57].mxu1 }
 0x405   : > { %2520 = vst [vmem:[%s4757_s10 + $0xb8] sm:$0xff] %v2488_v39  ;;  %v2385_v37 = vadd.f32 %v2384_v7, %v4745_v4  ;;  %v2386_v22 = vpop.f32.mrb[58].mxu1 }
 0x406   : > { %v2457_v30 = vadd.f32 %v2425_v54, %v2383_v33  ;;  %v2387_v61 = vadd.f32 %v2386_v22, %v4742_v3  ;;  %v2388_v20 = vpop.f32.mrb[59].mxu1 }
 0x407   : > { %v2458_v55 = vadd.f32 %v2426_v46, %v2385_v37  ;;  %v2389_v17 = vadd.f32 %v2388_v20, %v4745_v4 }
 0x408   : > { %v2489_v16 = vmax.f32 %v2457_v30, 0.0  ;;  %v2459_v19 = vadd.f32 %v2427_v43, %v2387_v61 }
 0x409   : > { %v2490_v49 = vmax.f32 %v2458_v55, 0.0  ;;  %v2460_v60 = vadd.f32 %v2428_v10, %v2389_v17 }
 0x40a   : > { %2521 = vst [vmem:[%s4757_s10 + $0xc0] sm:$0xff] %v2489_v16  ;;  %v2491_v51 = vmax.f32 %v2459_v19, 0.0 }
 0x40b   : > { %2522 = vst [vmem:[%s4757_s10 + $0xc8] sm:$0xff] %v2490_v49  ;;  %v2492_v8 = vmax.f32 %v2460_v60, 0.0  ;;  %v2392_v14 = vpop.f32.mrb[60].mxu1 }
 0x40c   : > { %2523 = vst [vmem:[%s4757_s10 + $0xd0] sm:$0xff] %v2491_v51  ;;  %v2393_v25 = vadd.f32 %v2392_v14, %v4742_v3  ;;  %v2394_v50 = vpop.f32.mrb[61].mxu1 }
 0x40d   : > { %2524 = vst [vmem:[%s4757_s10 + $0xd8] sm:$0xff] %v2492_v8  ;;  %v2395_v40 = vadd.f32 %v2394_v50, %v4745_v4  ;;  %v2396_v57 = vpop.f32.mrb[62].mxu1 }
 0x40e   : > { %v2461_v13 = vadd.f32 %v2429_v52, %v2393_v25  ;;  %v2397_v11 = vadd.f32 %v2396_v57, %v4742_v3  ;;  %v2398_v63 = vpop.f32.mrb[63].mxu1 }
 0x40f   : > { %v2462_v48 = vadd.f32 %v2430_v35, %v2395_v40  ;;  %v2399_v53 = vadd.f32 %v2398_v63, %v4745_v4 }
 0x410   : > { %v2493_v21 = vmax.f32 %v2461_v13, 0.0  ;;  %v2463_v34 = vadd.f32 %v2431_v5, %v2397_v11 }
 0x411   : > { %v2494_v29 = vmax.f32 %v2462_v48, 0.0  ;;  %v2464_v0 = vadd.f32 %v2432_v62, %v2399_v53 }
 0x412   : > { %2525 = vst [vmem:[%s4757_s10 + $0xe0] sm:$0xff] %v2493_v21  ;;  %v2495_v41 = vmax.f32 %v2463_v34, 0.0 }
 0x413   : > { %2526 = vst [vmem:[%s4757_s10 + $0xe8] sm:$0xff] %v2494_v29  ;;  %v2496_v3 = vmax.f32 %v2464_v0, 0.0 }
 0x414   : > { %2527 = vst [vmem:[%s4757_s10 + $0xf0] sm:$0xff] %v2495_v41 }
 0x415   : > { %2528 = vst [vmem:[%s4757_s10 + $0xf8] sm:$0xff] %v2496_v3 }
 0x416   : > { %3338 = shalt.err (!%p3335_p5)
}
 0x417   : > { %s3339_s21 = scalar_lea.hbm %s4853_s18, 4096  ;;  %s3343_s8 = scalar_lea.hbm %s5030_s12, 16384 }
 0x418   : > { %p3340_p8 = scmp.ne.s32.totalorder %s4853_s18, %s3339_s21  ;;  %p3344_p12 = scmp.lt.u32.totalorder %s4853_s18, %s5030_s12 }
 0x419   : > { %p3345_p2 = scmp.lt.u32.totalorder %s3343_s8, %s3339_s21  ;;  %p3347_p0 = scmp.lt.u32.totalorder %s3339_s21, %s4853_s18 }
 0x41a   : > { %p3341_p10 = pnand %p3340_p8, %p5031_p1 }
 0x41b   : > { %p3346_p4 = por %p3345_p2, %p3344_p12 }
 0x41c   : > { %p3342_p7 = pneg %p3341_p10 }
 0x41d   : > { %p3348_p6 = por %p3347_p0, %p3346_p4 }
 0x41f   : > { %p3349_p9 = pnand %p3348_p6, %p3342_p7 }
 0x421   : > { %3352 = shalt.err (!%p3349_p9)
}
 0x422   : > { %s3455_s7 = smov 256   ;;  %s3456_s15 = smov 16  }
 0x423   : > { %3118 = dma.vmem_to_hbm [thread:$0]  (%p5031_p1), %s4847_s30, 4096, %s4853_s18, %s4859_s16, %s3455_s7, %s3455_s7, %s3456_s15  }
 0x424 PF: > { %p3129_p3 = scmp.ge.s32.totalorder %s3447_s11, 2  ;;  %s2561_s17 = sand.u32 1, %s3407_s24  }
 0x425   : > { %p5032_p11 = scmp.ne.s32.totalorder %s4968_s9, 0  ;;  %s2562_s20 = scalar_lea.sflag [#allocation5], %s2561_s17 }
 0x427   : > { %p3125_p13 = pnand %p3129_p3, %p5032_p11 }
 0x429   : > { %3402 = dma.done.wait (!%p3125_p13), %s2562_s20, 4096  }
 0x42a   : > { %3404 = vsyncadd (!%p3125_p13), %s2562_s20, 4294963200  ;;  %s23_s11 = sadd.s32 1, %s3447_s11   ;;  %s5033_s23 = smov %s3584_s27 }
 0x42b   : > { %p20_p5 = scmp.ge.s32.totalorder %s23_s11, 6   ;;  %s5034_s30 = sld [smem:[#allocation9_spill]] }
 0x42c   : > { %s5035_s8 = sld [smem:[#allocation10_spill]]  ;;  %s5036_s9 = sld [smem:[#allocation11_spill]] }
 0x42d   : > { %s5037_s10 = sld [smem:[#allocation12_spill]]  ;;  %s5038_s24 = smov %s3411_s25 }
 0x42e   : > { %s5039_s25 = smov %s3415_s26  ;;  %s5040_s26 = smov %s3587_s14 }
 0x42f   : > { %s5041_s27 = smov %s3423_s28  ;;  %s5042_s28 = smov %s3427_s29 }
 0x430   : > { %s5043_s29 = smov %s5033_s23  ;;  %22 = sbr.rel (!%p20_p5) target bundleno = 11 (0xb), region = 98 }
 0x437   :  { %2567 = vsyncpa [#allocation4], 1 }
 0x438   :  { %2569 = vsyncpa [#allocation4 + $0x1], 1 }
 0x439   :  { %2570 = vsyncpa [#allocation5], 1 }
 0x43a   :  { %2572 = vsyncpa [#allocation5 + $0x1], 1 }

</bundles_post_ra>
